<compile_context>
chip_gen: v7x
topology: tpu7x:2x2x1
jax: 0.10.0
libtpu: 0.0.40
codegen_flags: <defaults>
</compile_context>

<pallas_src>
import functools

import jax
import jax.numpy as jnp
from jax.experimental import pallas as pl
from jax.experimental.pallas import tpu as pltpu

EPS = 1e-5            # PyTorch BatchNorm2d default eps
LANE = 128            # TPU lane width
VMEM_LIMIT = 32 * 1024 * 1024   # explicit scoped-VMEM cap (safe on v5e/v6e/v7x)


def _round_up(x, m):
    return (x + m - 1) // m * m


def _pick_block(total, target, mult=8):
    """Largest divisor of `total` that is <= target and a multiple of `mult`;
    falls back to `total` (full extent) if none exists."""
    for d in range(min(target, total), mult - 1, -1):
        if total % d == 0 and d % mult == 0:
            return d
    return total


# ---------------------------------------------------------------------------
# Pass 1: conv-as-9-shifted-matmuls + per-channel partial statistics
# ---------------------------------------------------------------------------
def _conv_stats_kernel(x_ref, w_ref, y_ref, ps_ref, *, w_out, cin_p):
    # x_ref : (3, TR, W+2, Cin_p)  bf16  -- 3 row-shifted halo'd views of the tile
    # w_ref : (3, 3, Cin_p, Cout_p) bf16 -- resident across the whole grid
    # y_ref : (TR*W, Cout_p)       f32   -- conv output tile
    # ps_ref: (1, 2, Cout_p)       f32   -- per-tile [sum; sum of squares]
    tr = x_ref.shape[1]
    rows = tr * w_out
    acc = jnp.zeros((rows, y_ref.shape[-1]), jnp.float32)
    for kh in range(3):
        for kw in range(3):
            xs = x_ref[kh, :, kw:kw + w_out, :].reshape(rows, cin_p)
            acc = acc + jnp.dot(xs, w_ref[kh, kw],
                                preferred_element_type=jnp.float32)
    y_ref[...] = acc
    stats = jnp.concatenate(
        [jnp.sum(acc, axis=0, keepdims=True),
         jnp.sum(acc * acc, axis=0, keepdims=True)], axis=0)     # (2, Cout_p)
    ps_ref[0] = stats


def _conv3x3_pass(x_nhwc_p, w_p, *, tr_target=8):
    """3x3 / stride-1 / pad-1 conv.

    x_nhwc_p : (N, H, W, Cin_p) f32 (channel-padded to a multiple of 128)
    w_p      : (3, 3, Cin_p, Cout_p) bf16
    Returns (y, sum, sumsq): y is (N*H*W, Cout_p) f32; sum/sumsq are (Cout_p,).
    """
    n, h, w, cin_p = x_nhwc_p.shape
    cout_p = w_p.shape[-1]
    nh = n * h
    wp = w + 2

    # Spatial halo pad + 3 row-shifted views: 3x duplication instead of the 9x
    # a full HBM im2col would cost; the kw shifts happen inside the kernel.
    xp = jnp.pad(x_nhwc_p, ((0, 0), (1, 1), (1, 1), (0, 0)))
    x_sh = jnp.stack([xp[:, kh:kh + h] for kh in range(3)], axis=0)
    x_sh = x_sh.reshape(3, nh, wp, cin_p).astype(jnp.bfloat16)   # bf16 MXU operands

    tr = _pick_block(nh, tr_target, 1)     # rows of the image per grid step
    grid_m = nh // tr
    rows = tr * w                          # matmul M rows per grid step

    kernel = functools.partial(_conv_stats_kernel, w_out=w, cin_p=cin_p)
    flops = 2 * nh * w * 9 * cin_p * cout_p
    bytes_accessed = (x_sh.size * 2 + w_p.size * 2
                      + nh * w * cout_p * 4 + grid_m * 2 * cout_p * 4)

    y, ps = pl.pallas_call(
        kernel,
        grid=(grid_m,),
        in_specs=[
            pl.BlockSpec((3, tr, wp, cin_p), lambda i: (0, i, 0, 0)),
            pl.BlockSpec((3, 3, cin_p, cout_p), lambda i: (0, 0, 0, 0)),
        ],
        out_specs=[
            pl.BlockSpec((rows, cout_p), lambda i: (i, 0)),
            pl.BlockSpec((1, 2, cout_p), lambda i: (i, 0, 0)),
        ],
        out_shape=[
            jax.ShapeDtypeStruct((nh * w, cout_p), jnp.float32),
            jax.ShapeDtypeStruct((grid_m, 2, cout_p), jnp.float32),
        ],
        compiler_params=pltpu.CompilerParams(
            dimension_semantics=("parallel",),
            vmem_limit_bytes=VMEM_LIMIT),
        cost_estimate=pl.CostEstimate(
            flops=flops, transcendentals=0, bytes_accessed=bytes_accessed),
    )(x_sh, w_p)

    tot = jnp.sum(ps, axis=0)              # tiny cross-tile reduction (XLA)
    return y, tot[0], tot[1]


# ---------------------------------------------------------------------------
# Pass 2: fused BN scale/shift (+ residual) + ReLU, tiled over M
# ---------------------------------------------------------------------------
def _bn_kernel(y_ref, sc_ref, sh_ref, o_ref):
    o_ref[...] = jnp.maximum(
        y_ref[...] * sc_ref[...] + sh_ref[...], 0.0).astype(o_ref.dtype)


def _bn_res_kernel(y_ref, sc_ref, sh_ref, r_ref, o_ref):
    o_ref[...] = jnp.maximum(
        y_ref[...] * sc_ref[...] + sh_ref[...] + r_ref[...], 0.0
    ).astype(o_ref.dtype)


def _bn_relu_pass(y, gamma_p, beta_p, ch_sum, ch_sumsq, m_count,
                  residual=None, *, tm_target=256):
    """relu(BN(y) [+ residual]) with BN folded to a per-channel scale/shift."""
    mtot, cp = y.shape
    mean = ch_sum / m_count
    var = ch_sumsq / m_count - mean * mean          # biased variance (train BN)
    inv = jax.lax.rsqrt(var + EPS)
    scale = (gamma_p * inv).astype(jnp.float32).reshape(1, cp)
    shift = (beta_p - mean * gamma_p * inv).astype(jnp.float32).reshape(1, cp)

    tm = _pick_block(mtot, tm_target, 8)
    in_specs = [
        pl.BlockSpec((tm, cp), lambda i: (i, 0)),
        pl.BlockSpec((1, cp), lambda i: (0, 0)),    # fetched once
        pl.BlockSpec((1, cp), lambda i: (0, 0)),
    ]
    args = [y, scale, shift]
    kernel = _bn_kernel
    if residual is not None:
        in_specs.append(pl.BlockSpec((tm, cp), lambda i: (i, 0)))
        args.append(residual)
        kernel = _bn_res_kernel

    return pl.pallas_call(
        kernel,
        grid=(mtot // tm,),
        in_specs=in_specs,
        out_specs=pl.BlockSpec((tm, cp), lambda i: (i, 0)),
        out_shape=jax.ShapeDtypeStruct((mtot, cp), jnp.float32),
        compiler_params=pltpu.CompilerParams(
            dimension_semantics=("parallel",),
            vmem_limit_bytes=VMEM_LIMIT),
    )(*args)


# ---------------------------------------------------------------------------
# BasicBlock forward
# ---------------------------------------------------------------------------
def basic_block_forward(x_nchw, params):
    """Pallas implementation of BasicBlock.forward (stride=1, downsample=None)."""
    w1, g1, b1, w2, g2, b2 = params               # conv weights OIHW, BN affine
    n, cin, h, w = x_nchw.shape
    cout = w1.shape[0]
    assert cin == cout, "identity residual requires Cin == Cout (no downsample)"
    assert w % 8 == 0, "W must be a multiple of 8 for this tiling"

    cp = _round_up(max(cin, cout), LANE)          # lane-dense channel padding
    m = n * h * w

    x = jnp.transpose(x_nchw, (0, 2, 3, 1)).astype(jnp.float32)       # NHWC
    x_p = jnp.pad(x, ((0, 0), (0, 0), (0, 0), (0, cp - cin)))

    def prep_w(w_oihw):
        wk = jnp.transpose(w_oihw, (2, 3, 1, 0))                      # (3,3,Ci,Co)
        wk = jnp.pad(wk, ((0, 0), (0, 0),
                          (0, cp - wk.shape[2]), (0, cp - wk.shape[3])))
        return wk.astype(jnp.bfloat16)

    def prep_c(v):
        return jnp.pad(v.astype(jnp.float32), (0, cp - v.shape[0]))

    w1_p, w2_p = prep_w(w1), prep_w(w2)
    g1_p, b1_p, g2_p, b2_p = map(prep_c, (g1, b1, g2, b2))

    # out = relu(bn1(conv1(x)))          (no residual: zeros input eliminated)
    y1, s1, q1 = _conv3x3_pass(x_p, w1_p)
    h1 = _bn_relu_pass(y1, g1_p, b1_p, s1, q1, m)

    # out = relu(bn2(conv2(out)) + identity)
    y2, s2, q2 = _conv3x3_pass(h1.reshape(n, h, w, cp), w2_p)
    identity = x_p.reshape(m, cp)
    out = _bn_relu_pass(y2, g2_p, b2_p, s2, q2, m, residual=identity)

    out = out.reshape(n, h, w, cp)[..., :cout]
    return jnp.transpose(out, (0, 3, 1, 2))       # back to NCHW


# ---------------------------------------------------------------------------
# Plain-JAX reference mirroring the PyTorch module (training-mode BN).
# ---------------------------------------------------------------------------
def reference_forward(x_nchw, params, *, matmul_dtype=jnp.bfloat16):
    """With matmul_dtype=bf16 this matches the kernel's mixed-precision policy
    (bf16 MXU operands, f32 accumulation); with f32 it is the exact PyTorch
    forward semantics."""
    w1, g1, b1, w2, g2, b2 = params
    x = jnp.transpose(x_nchw, (0, 2, 3, 1)).astype(jnp.float32)

    def conv3x3(inp, w_oihw):
        w_hwio = jnp.transpose(w_oihw, (2, 3, 1, 0))
        return jax.lax.conv_general_dilated(
            inp.astype(matmul_dtype), w_hwio.astype(matmul_dtype),
            window_strides=(1, 1), padding=((1, 1), (1, 1)),
            dimension_numbers=("NHWC", "HWIO", "NHWC"),
            preferred_element_type=jnp.float32)

    def bn(inp, g, b):
        mean = jnp.mean(inp, axis=(0, 1, 2), keepdims=True)
        var = jnp.mean((inp - mean) ** 2, axis=(0, 1, 2), keepdims=True)
        return (inp - mean) * jax.lax.rsqrt(var + EPS) * g + b

    h1 = jax.nn.relu(bn(conv3x3(x, w1), g1, b1))
    out = jax.nn.relu(bn(conv3x3(h1, w2), g2, b2) + x)
    return jnp.transpose(out, (0, 3, 1, 2))


if __name__ == "__main__":
    key = jax.random.PRNGKey(0)
    kx, kw1, kw2, kg1, kb1, kg2, kb2 = jax.random.split(key, 7)

    # Small shapes consistent with the module: BasicBlock(in_size=4, out_size=4).
    N, C, H, W = 2, 4, 16, 16
    x = jax.random.normal(kx, (N, C, H, W), jnp.float32)
    w1 = 0.1 * jax.random.normal(kw1, (C, C, 3, 3), jnp.float32)
    w2 = 0.1 * jax.random.normal(kw2, (C, C, 3, 3), jnp.float32)
    g1 = 1.0 + 0.1 * jax.random.normal(kg1, (C,), jnp.float32)
    b1 = 0.1 * jax.random.normal(kb1, (C,), jnp.float32)
    g2 = 1.0 + 0.1 * jax.random.normal(kg2, (C,), jnp.float32)
    b2 = 0.1 * jax.random.normal(kb2, (C,), jnp.float32)
    params = (w1, g1, b1, w2, g2, b2)

    fwd = jax.jit(basic_block_forward)
    out = jax.block_until_ready(fwd(x, params))
    assert out.shape == (N, C, H, W), out.shape

    # Tight check vs a reference using the same bf16-operand / f32-acc policy.
    ref = jax.block_until_ready(reference_forward(x, params))
    err = float(jnp.max(jnp.abs(out - ref)))
    assert err < 2e-2, f"mismatch vs bf16-operand reference: {err}"

    # Loose sanity bound vs exact f32 PyTorch semantics (deviation is solely the
    # deliberate bf16 MXU-operand policy propagated through two conv+BN stages).
    ref32 = jax.block_until_ready(
        reference_forward(x, params, matmul_dtype=jnp.float32))
    err32 = float(jnp.max(jnp.abs(out - ref32)))
    assert err32 < 0.25, f"gross mismatch vs f32 reference: {err32}"

    print("KERNEL_OK")
</pallas_src>

<mosaic_0001>
module attributes {stable_mosaic.version = 11 : i64} {
  func.func @_conv_stats_kernel(%arg0: i32, %arg1: memref<3x8x18x128xbf16, #tpu.memory_space<vmem>>, %arg2: memref<3x3x128x128xbf16, #tpu.memory_space<vmem>>, %arg3: memref<128x128xf32, #tpu.memory_space<vmem>>, %arg4: memref<1x2x128xf32, #tpu.memory_space<vmem>>) attributes {dimension_semantics = [#tpu.dimension_semantics<parallel>], iteration_bounds = array<i64: 4>, scalar_prefetch = 0 : i64, scratch_operands = 0 : i64, tpu.core_type = #tpu.core_type<tc>, window_params = [{transform_indices = @transform_0, window_bounds = array<i64: 3, 8, 18, 128>}, {pipeline_mode = #tpu.pipeline_mode<synchronous>, transform_indices = @transform_1, window_bounds = array<i64: 3, 3, 128, 128>}, {transform_indices = @transform_2, window_bounds = array<i64: 128, 128>}, {transform_indices = @transform_3, window_bounds = array<i64: 1, 2, 128>}]} {
    %cst = arith.constant 0.000000e+00 : f32
    %0 = vector.broadcast %cst : f32 to vector<128x128xf32>
    %c0 = arith.constant 0 : index
    %c0_0 = arith.constant 0 : index
    %c0_1 = arith.constant 0 : index
    %c0_2 = arith.constant 0 : index
    %1 = vector.load %arg1[%c0, %c0_0, %c0_1, %c0_2] : memref<3x8x18x128xbf16, #tpu.memory_space<vmem>>, vector<1x8x16x128xbf16>
    %2 = vector.shape_cast %1 : vector<1x8x16x128xbf16> to vector<8x16x128xbf16>
    %3 = vector.shape_cast %2 : vector<8x16x128xbf16> to vector<128x128xbf16>
    %c0_3 = arith.constant 0 : index
    %c0_4 = arith.constant 0 : index
    %c0_5 = arith.constant 0 : index
    %c0_6 = arith.constant 0 : index
    %4 = vector.load %arg2[%c0_3, %c0_4, %c0_5, %c0_6] : memref<3x3x128x128xbf16, #tpu.memory_space<vmem>>, vector<1x1x128x128xbf16>
    %5 = vector.shape_cast %4 : vector<1x1x128x128xbf16> to vector<128x128xbf16>
    %cst_7 = arith.constant dense<0.000000e+00> : vector<128x128xf32>
    %6 = tpu.matmul %3, %5, %cst_7 {dimension_numbers = #tpu.dot_dimension_numbers<[1], [0], [0], [1], [0, 0, 1, 1], [], []>} : vector<128x128xbf16>, vector<128x128xbf16>, vector<128x128xf32> -> vector<128x128xf32>
    %7 = arith.addf %0, %6 : vector<128x128xf32>
    %c0_8 = arith.constant 0 : index
    %c0_9 = arith.constant 0 : index
    %c1 = arith.constant 1 : index
    %c0_10 = arith.constant 0 : index
    %8 = vector.load %arg1[%c0_8, %c0_9, %c1, %c0_10] : memref<3x8x18x128xbf16, #tpu.memory_space<vmem>>, vector<1x8x16x128xbf16>
    %9 = vector.shape_cast %8 : vector<1x8x16x128xbf16> to vector<8x16x128xbf16>
    %10 = vector.shape_cast %9 : vector<8x16x128xbf16> to vector<128x128xbf16>
    %c0_11 = arith.constant 0 : index
    %c1_12 = arith.constant 1 : index
    %c0_13 = arith.constant 0 : index
    %c0_14 = arith.constant 0 : index
    %11 = vector.load %arg2[%c0_11, %c1_12, %c0_13, %c0_14] : memref<3x3x128x128xbf16, #tpu.memory_space<vmem>>, vector<1x1x128x128xbf16>
    %12 = vector.shape_cast %11 : vector<1x1x128x128xbf16> to vector<128x128xbf16>
    %cst_15 = arith.constant dense<0.000000e+00> : vector<128x128xf32>
    %13 = tpu.matmul %10, %12, %cst_15 {dimension_numbers = #tpu.dot_dimension_numbers<[1], [0], [0], [1], [0, 0, 1, 1], [], []>} : vector<128x128xbf16>, vector<128x128xbf16>, vector<128x128xf32> -> vector<128x128xf32>
    %14 = arith.addf %7, %13 : vector<128x128xf32>
    %c0_16 = arith.constant 0 : index
    %c0_17 = arith.constant 0 : index
    %c2 = arith.constant 2 : index
    %c0_18 = arith.constant 0 : index
    %15 = vector.load %arg1[%c0_16, %c0_17, %c2, %c0_18] : memref<3x8x18x128xbf16, #tpu.memory_space<vmem>>, vector<1x8x16x128xbf16>
    %16 = vector.shape_cast %15 : vector<1x8x16x128xbf16> to vector<8x16x128xbf16>
    %17 = vector.shape_cast %16 : vector<8x16x128xbf16> to vector<128x128xbf16>
    %c0_19 = arith.constant 0 : index
    %c2_20 = arith.constant 2 : index
    %c0_21 = arith.constant 0 : index
    %c0_22 = arith.constant 0 : index
    %18 = vector.load %arg2[%c0_19, %c2_20, %c0_21, %c0_22] : memref<3x3x128x128xbf16, #tpu.memory_space<vmem>>, vector<1x1x128x128xbf16>
    %19 = vector.shape_cast %18 : vector<1x1x128x128xbf16> to vector<128x128xbf16>
    %cst_23 = arith.constant dense<0.000000e+00> : vector<128x128xf32>
    %20 = tpu.matmul %17, %19, %cst_23 {dimension_numbers = #tpu.dot_dimension_numbers<[1], [0], [0], [1], [0, 0, 1, 1], [], []>} : vector<128x128xbf16>, vector<128x128xbf16>, vector<128x128xf32> -> vector<128x128xf32>
    %21 = arith.addf %14, %20 : vector<128x128xf32>
    %c1_24 = arith.constant 1 : index
    %c0_25 = arith.constant 0 : index
    %c0_26 = arith.constant 0 : index
    %c0_27 = arith.constant 0 : index
    %22 = vector.load %arg1[%c1_24, %c0_25, %c0_26, %c0_27] : memref<3x8x18x128xbf16, #tpu.memory_space<vmem>>, vector<1x8x16x128xbf16>
    %23 = vector.shape_cast %22 : vector<1x8x16x128xbf16> to vector<8x16x128xbf16>
    %24 = vector.shape_cast %23 : vector<8x16x128xbf16> to vector<128x128xbf16>
    %c1_28 = arith.constant 1 : index
    %c0_29 = arith.constant 0 : index
    %c0_30 = arith.constant 0 : index
    %c0_31 = arith.constant 0 : index
    %25 = vector.load %arg2[%c1_28, %c0_29, %c0_30, %c0_31] : memref<3x3x128x128xbf16, #tpu.memory_space<vmem>>, vector<1x1x128x128xbf16>
    %26 = vector.shape_cast %25 : vector<1x1x128x128xbf16> to vector<128x128xbf16>
    %cst_32 = arith.constant dense<0.000000e+00> : vector<128x128xf32>
    %27 = tpu.matmul %24, %26, %cst_32 {dimension_numbers = #tpu.dot_dimension_numbers<[1], [0], [0], [1], [0, 0, 1, 1], [], []>} : vector<128x128xbf16>, vector<128x128xbf16>, vector<128x128xf32> -> vector<128x128xf32>
    %28 = arith.addf %21, %27 : vector<128x128xf32>
    %c1_33 = arith.constant 1 : index
    %c0_34 = arith.constant 0 : index
    %c1_35 = arith.constant 1 : index
    %c0_36 = arith.constant 0 : index
    %29 = vector.load %arg1[%c1_33, %c0_34, %c1_35, %c0_36] : memref<3x8x18x128xbf16, #tpu.memory_space<vmem>>, vector<1x8x16x128xbf16>
    %30 = vector.shape_cast %29 : vector<1x8x16x128xbf16> to vector<8x16x128xbf16>
    %31 = vector.shape_cast %30 : vector<8x16x128xbf16> to vector<128x128xbf16>
    %c1_37 = arith.constant 1 : index
    %c1_38 = arith.constant 1 : index
    %c0_39 = arith.constant 0 : index
    %c0_40 = arith.constant 0 : index
    %32 = vector.load %arg2[%c1_37, %c1_38, %c0_39, %c0_40] : memref<3x3x128x128xbf16, #tpu.memory_space<vmem>>, vector<1x1x128x128xbf16>
    %33 = vector.shape_cast %32 : vector<1x1x128x128xbf16> to vector<128x128xbf16>
    %cst_41 = arith.constant dense<0.000000e+00> : vector<128x128xf32>
    %34 = tpu.matmul %31, %33, %cst_41 {dimension_numbers = #tpu.dot_dimension_numbers<[1], [0], [0], [1], [0, 0, 1, 1], [], []>} : vector<128x128xbf16>, vector<128x128xbf16>, vector<128x128xf32> -> vector<128x128xf32>
    %35 = arith.addf %28, %34 : vector<128x128xf32>
    %c1_42 = arith.constant 1 : index
    %c0_43 = arith.constant 0 : index
    %c2_44 = arith.constant 2 : index
    %c0_45 = arith.constant 0 : index
    %36 = vector.load %arg1[%c1_42, %c0_43, %c2_44, %c0_45] : memref<3x8x18x128xbf16, #tpu.memory_space<vmem>>, vector<1x8x16x128xbf16>
    %37 = vector.shape_cast %36 : vector<1x8x16x128xbf16> to vector<8x16x128xbf16>
    %38 = vector.shape_cast %37 : vector<8x16x128xbf16> to vector<128x128xbf16>
    %c1_46 = arith.constant 1 : index
    %c2_47 = arith.constant 2 : index
    %c0_48 = arith.constant 0 : index
    %c0_49 = arith.constant 0 : index
    %39 = vector.load %arg2[%c1_46, %c2_47, %c0_48, %c0_49] : memref<3x3x128x128xbf16, #tpu.memory_space<vmem>>, vector<1x1x128x128xbf16>
    %40 = vector.shape_cast %39 : vector<1x1x128x128xbf16> to vector<128x128xbf16>
    %cst_50 = arith.constant dense<0.000000e+00> : vector<128x128xf32>
    %41 = tpu.matmul %38, %40, %cst_50 {dimension_numbers = #tpu.dot_dimension_numbers<[1], [0], [0], [1], [0, 0, 1, 1], [], []>} : vector<128x128xbf16>, vector<128x128xbf16>, vector<128x128xf32> -> vector<128x128xf32>
    %42 = arith.addf %35, %41 : vector<128x128xf32>
    %c2_51 = arith.constant 2 : index
    %c0_52 = arith.constant 0 : index
    %c0_53 = arith.constant 0 : index
    %c0_54 = arith.constant 0 : index
    %43 = vector.load %arg1[%c2_51, %c0_52, %c0_53, %c0_54] : memref<3x8x18x128xbf16, #tpu.memory_space<vmem>>, vector<1x8x16x128xbf16>
    %44 = vector.shape_cast %43 : vector<1x8x16x128xbf16> to vector<8x16x128xbf16>
    %45 = vector.shape_cast %44 : vector<8x16x128xbf16> to vector<128x128xbf16>
    %c2_55 = arith.constant 2 : index
    %c0_56 = arith.constant 0 : index
    %c0_57 = arith.constant 0 : index
    %c0_58 = arith.constant 0 : index
    %46 = vector.load %arg2[%c2_55, %c0_56, %c0_57, %c0_58] : memref<3x3x128x128xbf16, #tpu.memory_space<vmem>>, vector<1x1x128x128xbf16>
    %47 = vector.shape_cast %46 : vector<1x1x128x128xbf16> to vector<128x128xbf16>
    %cst_59 = arith.constant dense<0.000000e+00> : vector<128x128xf32>
    %48 = tpu.matmul %45, %47, %cst_59 {dimension_numbers = #tpu.dot_dimension_numbers<[1], [0], [0], [1], [0, 0, 1, 1], [], []>} : vector<128x128xbf16>, vector<128x128xbf16>, vector<128x128xf32> -> vector<128x128xf32>
    %49 = arith.addf %42, %48 : vector<128x128xf32>
    %c2_60 = arith.constant 2 : index
    %c0_61 = arith.constant 0 : index
    %c1_62 = arith.constant 1 : index
    %c0_63 = arith.constant 0 : index
    %50 = vector.load %arg1[%c2_60, %c0_61, %c1_62, %c0_63] : memref<3x8x18x128xbf16, #tpu.memory_space<vmem>>, vector<1x8x16x128xbf16>
    %51 = vector.shape_cast %50 : vector<1x8x16x128xbf16> to vector<8x16x128xbf16>
    %52 = vector.shape_cast %51 : vector<8x16x128xbf16> to vector<128x128xbf16>
    %c2_64 = arith.constant 2 : index
    %c1_65 = arith.constant 1 : index
    %c0_66 = arith.constant 0 : index
    %c0_67 = arith.constant 0 : index
    %53 = vector.load %arg2[%c2_64, %c1_65, %c0_66, %c0_67] : memref<3x3x128x128xbf16, #tpu.memory_space<vmem>>, vector<1x1x128x128xbf16>
    %54 = vector.shape_cast %53 : vector<1x1x128x128xbf16> to vector<128x128xbf16>
    %cst_68 = arith.constant dense<0.000000e+00> : vector<128x128xf32>
    %55 = tpu.matmul %52, %54, %cst_68 {dimension_numbers = #tpu.dot_dimension_numbers<[1], [0], [0], [1], [0, 0, 1, 1], [], []>} : vector<128x128xbf16>, vector<128x128xbf16>, vector<128x128xf32> -> vector<128x128xf32>
    %56 = arith.addf %49, %55 : vector<128x128xf32>
    %c2_69 = arith.constant 2 : index
    %c0_70 = arith.constant 0 : index
    %c2_71 = arith.constant 2 : index
    %c0_72 = arith.constant 0 : index
    %57 = vector.load %arg1[%c2_69, %c0_70, %c2_71, %c0_72] : memref<3x8x18x128xbf16, #tpu.memory_space<vmem>>, vector<1x8x16x128xbf16>
    %58 = vector.shape_cast %57 : vector<1x8x16x128xbf16> to vector<8x16x128xbf16>
    %59 = vector.shape_cast %58 : vector<8x16x128xbf16> to vector<128x128xbf16>
    %c2_73 = arith.constant 2 : index
    %c2_74 = arith.constant 2 : index
    %c0_75 = arith.constant 0 : index
    %c0_76 = arith.constant 0 : index
    %60 = vector.load %arg2[%c2_73, %c2_74, %c0_75, %c0_76] : memref<3x3x128x128xbf16, #tpu.memory_space<vmem>>, vector<1x1x128x128xbf16>
    %61 = vector.shape_cast %60 : vector<1x1x128x128xbf16> to vector<128x128xbf16>
    %cst_77 = arith.constant dense<0.000000e+00> : vector<128x128xf32>
    %62 = tpu.matmul %59, %61, %cst_77 {dimension_numbers = #tpu.dot_dimension_numbers<[1], [0], [0], [1], [0, 0, 1, 1], [], []>} : vector<128x128xbf16>, vector<128x128xbf16>, vector<128x128xf32> -> vector<128x128xf32>
    %63 = arith.addf %56, %62 : vector<128x128xf32>
    %c0_78 = arith.constant 0 : index
    %c0_79 = arith.constant 0 : index
    %64 = vector.load %arg3[%c0_78, %c0_79] : memref<128x128xf32, #tpu.memory_space<vmem>>, vector<128x128xf32>
    tpu.vector_store %arg3[%c0_78, %c0_79], %63 {strides = array<i32>} : memref<128x128xf32, #tpu.memory_space<vmem>>, vector<128x128xf32>,
    %cst_80 = arith.constant dense<0.000000e+00> : vector<128xf32>
    %65 = vector.multi_reduction <add>, %63, %cst_80 [0] : vector<128x128xf32> to vector<128xf32>
    %66 = vector.shape_cast %65 : vector<128xf32> to vector<1x128xf32>
    %67 = arith.mulf %63, %63 : vector<128x128xf32>
    %cst_81 = arith.constant dense<0.000000e+00> : vector<128xf32>
    %68 = vector.multi_reduction <add>, %67, %cst_81 [0] : vector<128x128xf32> to vector<128xf32>
    %69 = vector.shape_cast %68 : vector<128xf32> to vector<1x128xf32>
    %70 = tpu.concatenate %66, %69 in 0 : vector<1x128xf32>, vector<1x128xf32> -> vector<2x128xf32>
    %c0_82 = arith.constant 0 : index
    %c0_83 = arith.constant 0 : index
    %c0_84 = arith.constant 0 : index
    %71 = vector.load %arg4[%c0_82, %c0_83, %c0_84] : memref<1x2x128xf32, #tpu.memory_space<vmem>>, vector<1x2x128xf32>
    %72 = vector.shape_cast %71 : vector<1x2x128xf32> to vector<2x128xf32>
    %73 = vector.shape_cast %70 : vector<2x128xf32> to vector<1x2x128xf32>
    tpu.vector_store %arg4[%c0_82, %c0_83, %c0_84], %73 {strides = array<i32>} : memref<1x2x128xf32, #tpu.memory_space<vmem>>, vector<1x2x128xf32>,
    return
  }
  func.func @transform_0(%arg0: i32) -> (i32, i32, i32, i32) {
    %c0_i32 = arith.constant 0 : i32
    %c0_i32_0 = arith.constant 0 : i32
    %c0_i32_1 = arith.constant 0 : i32
    %c0_i32_2 = arith.constant 0 : i32
    return %c0_i32, %arg0, %c0_i32_0, %c0_i32_1 : i32, i32, i32, i32
  }
  func.func @transform_1(%arg0: i32) -> (i32, i32, i32, i32) {
    %c0_i32 = arith.constant 0 : i32
    %c0_i32_0 = arith.constant 0 : i32
    %c0_i32_1 = arith.constant 0 : i32
    %c0_i32_2 = arith.constant 0 : i32
    %c0_i32_3 = arith.constant 0 : i32
    return %c0_i32, %c0_i32_0, %c0_i32_1, %c0_i32_2 : i32, i32, i32, i32
  }
  func.func @transform_2(%arg0: i32) -> (i32, i32) {
    %c0_i32 = arith.constant 0 : i32
    %c0_i32_0 = arith.constant 0 : i32
    return %arg0, %c0_i32 : i32, i32
  }
  func.func @transform_3(%arg0: i32) -> (i32, i32, i32) {
    %c0_i32 = arith.constant 0 : i32
    %c0_i32_0 = arith.constant 0 : i32
    %c0_i32_1 = arith.constant 0 : i32
    return %arg0, %c0_i32, %c0_i32_0 : i32, i32, i32
  }
}

module attributes {stable_mosaic.version = 11 : i64} {
  func.func @_bn_kernel(%arg0: i32, %arg1: memref<256x128xf32, #tpu.memory_space<vmem>>, %arg2: memref<1x128xf32, #tpu.memory_space<vmem>>, %arg3: memref<1x128xf32, #tpu.memory_space<vmem>>, %arg4: memref<256x128xf32, #tpu.memory_space<vmem>>) attributes {dimension_semantics = [#tpu.dimension_semantics<parallel>], iteration_bounds = array<i64: 2>, scalar_prefetch = 0 : i64, scratch_operands = 0 : i64, tpu.core_type = #tpu.core_type<tc>, window_params = [{transform_indices = @transform_0, window_bounds = array<i64: 256, 128>}, {pipeline_mode = #tpu.pipeline_mode<synchronous>, transform_indices = @transform_1, window_bounds = array<i64: 1, 128>}, {pipeline_mode = #tpu.pipeline_mode<synchronous>, transform_indices = @transform_2, window_bounds = array<i64: 1, 128>}, {transform_indices = @transform_3, window_bounds = array<i64: 256, 128>}]} {
    %c0 = arith.constant 0 : index
    %c0_0 = arith.constant 0 : index
    %0 = vector.load %arg1[%c0, %c0_0] : memref<256x128xf32, #tpu.memory_space<vmem>>, vector<256x128xf32>
    %c0_1 = arith.constant 0 : index
    %c0_2 = arith.constant 0 : index
    %1 = vector.load %arg2[%c0_1, %c0_2] : memref<1x128xf32, #tpu.memory_space<vmem>>, vector<1x128xf32>
    %2 = vector.broadcast %1 : vector<1x128xf32> to vector<256x128xf32>
    %3 = arith.mulf %0, %2 : vector<256x128xf32>
    %c0_3 = arith.constant 0 : index
    %c0_4 = arith.constant 0 : index
    %4 = vector.load %arg3[%c0_3, %c0_4] : memref<1x128xf32, #tpu.memory_space<vmem>>, vector<1x128xf32>
    %5 = vector.broadcast %4 : vector<1x128xf32> to vector<256x128xf32>
    %6 = arith.addf %3, %5 : vector<256x128xf32>
    %cst = arith.constant 0.000000e+00 : f32
    %7 = vector.broadcast %cst : f32 to vector<256x128xf32>
    %8 = arith.maximumf %6, %7 : vector<256x128xf32>
    %c0_5 = arith.constant 0 : index
    %c0_6 = arith.constant 0 : index
    %9 = vector.load %arg4[%c0_5, %c0_6] : memref<256x128xf32, #tpu.memory_space<vmem>>, vector<256x128xf32>
    tpu.vector_store %arg4[%c0_5, %c0_6], %8 {strides = array<i32>} : memref<256x128xf32, #tpu.memory_space<vmem>>, vector<256x128xf32>,
    return
  }
  func.func @transform_0(%arg0: i32) -> (i32, i32) {
    %c0_i32 = arith.constant 0 : i32
    %c0_i32_0 = arith.constant 0 : i32
    return %arg0, %c0_i32 : i32, i32
  }
  func.func @transform_1(%arg0: i32) -> (i32, i32) {
    %c0_i32 = arith.constant 0 : i32
    %c0_i32_0 = arith.constant 0 : i32
    %c0_i32_1 = arith.constant 0 : i32
    return %c0_i32, %c0_i32_0 : i32, i32
  }
  func.func @transform_2(%arg0: i32) -> (i32, i32) {
    %c0_i32 = arith.constant 0 : i32
    %c0_i32_0 = arith.constant 0 : i32
    %c0_i32_1 = arith.constant 0 : i32
    return %c0_i32, %c0_i32_0 : i32, i32
  }
  func.func @transform_3(%arg0: i32) -> (i32, i32) {
    %c0_i32 = arith.constant 0 : i32
    %c0_i32_0 = arith.constant 0 : i32
    return %arg0, %c0_i32 : i32, i32
  }
}

module attributes {stable_mosaic.version = 11 : i64} {
  func.func @_bn_res_kernel(%arg0: i32, %arg1: memref<256x128xf32, #tpu.memory_space<vmem>>, %arg2: memref<1x128xf32, #tpu.memory_space<vmem>>, %arg3: memref<1x128xf32, #tpu.memory_space<vmem>>, %arg4: memref<256x128xf32, #tpu.memory_space<vmem>>, %arg5: memref<256x128xf32, #tpu.memory_space<vmem>>) attributes {dimension_semantics = [#tpu.dimension_semantics<parallel>], iteration_bounds = array<i64: 2>, scalar_prefetch = 0 : i64, scratch_operands = 0 : i64, tpu.core_type = #tpu.core_type<tc>, window_params = [{transform_indices = @transform_0, window_bounds = array<i64: 256, 128>}, {pipeline_mode = #tpu.pipeline_mode<synchronous>, transform_indices = @transform_1, window_bounds = array<i64: 1, 128>}, {pipeline_mode = #tpu.pipeline_mode<synchronous>, transform_indices = @transform_2, window_bounds = array<i64: 1, 128>}, {transform_indices = @transform_3, window_bounds = array<i64: 256, 128>}, {transform_indices = @transform_4, window_bounds = array<i64: 256, 128>}]} {
    %c0 = arith.constant 0 : index
    %c0_0 = arith.constant 0 : index
    %0 = vector.load %arg1[%c0, %c0_0] : memref<256x128xf32, #tpu.memory_space<vmem>>, vector<256x128xf32>
    %c0_1 = arith.constant 0 : index
    %c0_2 = arith.constant 0 : index
    %1 = vector.load %arg2[%c0_1, %c0_2] : memref<1x128xf32, #tpu.memory_space<vmem>>, vector<1x128xf32>
    %2 = vector.broadcast %1 : vector<1x128xf32> to vector<256x128xf32>
    %3 = arith.mulf %0, %2 : vector<256x128xf32>
    %c0_3 = arith.constant 0 : index
    %c0_4 = arith.constant 0 : index
    %4 = vector.load %arg3[%c0_3, %c0_4] : memref<1x128xf32, #tpu.memory_space<vmem>>, vector<1x128xf32>
    %5 = vector.broadcast %4 : vector<1x128xf32> to vector<256x128xf32>
    %6 = arith.addf %3, %5 : vector<256x128xf32>
    %c0_5 = arith.constant 0 : index
    %c0_6 = arith.constant 0 : index
    %7 = vector.load %arg4[%c0_5, %c0_6] : memref<256x128xf32, #tpu.memory_space<vmem>>, vector<256x128xf32>
    %8 = arith.addf %6, %7 : vector<256x128xf32>
    %cst = arith.constant 0.000000e+00 : f32
    %9 = vector.broadcast %cst : f32 to vector<256x128xf32>
    %10 = arith.maximumf %8, %9 : vector<256x128xf32>
    %c0_7 = arith.constant 0 : index
    %c0_8 = arith.constant 0 : index
    %11 = vector.load %arg5[%c0_7, %c0_8] : memref<256x128xf32, #tpu.memory_space<vmem>>, vector<256x128xf32>
    tpu.vector_store %arg5[%c0_7, %c0_8], %10 {strides = array<i32>} : memref<256x128xf32, #tpu.memory_space<vmem>>, vector<256x128xf32>,
    return
  }
  func.func @transform_0(%arg0: i32) -> (i32, i32) {
    %c0_i32 = arith.constant 0 : i32
    %c0_i32_0 = arith.constant 0 : i32
    return %arg0, %c0_i32 : i32, i32
  }
  func.func @transform_1(%arg0: i32) -> (i32, i32) {
    %c0_i32 = arith.constant 0 : i32
    %c0_i32_0 = arith.constant 0 : i32
    %c0_i32_1 = arith.constant 0 : i32
    return %c0_i32, %c0_i32_0 : i32, i32
  }
  func.func @transform_2(%arg0: i32) -> (i32, i32) {
    %c0_i32 = arith.constant 0 : i32
    %c0_i32_0 = arith.constant 0 : i32
    %c0_i32_1 = arith.constant 0 : i32
    return %c0_i32, %c0_i32_0 : i32, i32
  }
  func.func @transform_3(%arg0: i32) -> (i32, i32) {
    %c0_i32 = arith.constant 0 : i32
    %c0_i32_0 = arith.constant 0 : i32
    return %arg0, %c0_i32 : i32, i32
  }
  func.func @transform_4(%arg0: i32) -> (i32, i32) {
    %c0_i32 = arith.constant 0 : i32
    %c0_i32_0 = arith.constant 0 : i32
    return %arg0, %c0_i32 : i32, i32
  }
}

</mosaic_0001>

<bundles_post_ra>
// kernel: basic_block_forward.5
= control target key start
LH: loop header
LB: loop body
LE: loop exit
PB: predicated region body
PF: predicated region fallthrough
CT: control target
= control target key end

     0   :  { %s453_s12 = smov 0   ;;  %s612_s0 = inlined_call_operand.vmem [shape: f32[512,128], index: 0, kind: input, shape index: {}]   ;;  %s613_s1 = inlined_call_operand.vmem [shape: f32[1,128], index: 1, kind: input, shape index: {}]   ;;  %s614_s2 = inlined_call_operand.vmem [shape: f32[1,128], index: 2, kind: input, shape index: {}]   ;;  %s615_s3 = inlined_call_operand.vmem [shape: f32[512,128], index: 3, kind: output, shape index: {}]  }
   0x1 LB: > { %s404_s13 = sadd.s32 4294967295, %s431_s12   ;;  %p408_p0 = scmp.ge.s32.totalorder %s431_s12, 1  ;;  %s431_s12 = sphi %s453_s12, %s13_s12  }
   0x2   : > { %p138_p1 = scmp.lt.s32.totalorder %s431_s12, 3 }
   0x4   : > { %p139_p2 = pnand %p408_p0, %p138_p1 }
   0x5   : > { %s409_s14 = sshll.u32 (!%p139_p2), %s404_s13, 5  ;;  %v464_v0 = vld [vmem:[%s613_s1] ss:$0 sm:$0xff] (!%p139_p2) }
   0x6   : > { %142 = sbr.rel (%p139_p2) target bundleno = 46 (0x2e), region = 32  ;;  %p163_p3 = scmp.lt.s32.totalorder (!%p139_p2), %s409_s14, 63  ;;  %v474_v1 = vld [vmem:[%s614_s2] ss:$0 sm:$0xff] (!%p139_p2) }
   0xd   : > { %s617_s14 = smov (!%p163_p3, %s409_s14), 63 }
   0xe   : > { %s410_s15 = sshll.u32 %s617_s14, 3 }
   0xf   : > { %s469_s20 = scalar_lea.vmem %s612_s0, %s410_s15  ;;  %s497_s25 = scalar_lea.vmem %s615_s3, %s410_s15 }
  0x10   : > { %v174_v2 = vld [vmem:[%s469_s20] sm:$0xff]  ;;  %v175_v3 = vld [vmem:[%s469_s20 + $0x8] sm:$0xff]  ;;  %v176_v4 = vld [vmem:[%s469_s20 + $0x10] sm:$0xff] }
  0x11   : > { %v213_v5 = vmul.f32 %v464_v0, %v174_v2  ;;  %v214_v6 = vmul.f32 %v464_v0, %v175_v3  ;;  %v215_v7 = vmul.f32 %v464_v0, %v176_v4  ;;  %v177_v8 = vld [vmem:[%s469_s20 + $0x18] sm:$0xff]  ;;  %v178_v9 = vld [vmem:[%s469_s20 + $0x20] sm:$0xff]  ;;  %v179_v10 = vld [vmem:[%s469_s20 + $0x28] sm:$0xff] }
  0x12   : > { %v216_v11 = vmul.f32 %v464_v0, %v177_v8  ;;  %v217_v12 = vmul.f32 %v464_v0, %v178_v9  ;;  %v218_v13 = vmul.f32 %v464_v0, %v179_v10  ;;  %v180_v14 = vld [vmem:[%s469_s20 + $0x30] sm:$0xff]  ;;  %v181_v15 = vld [vmem:[%s469_s20 + $0x38] sm:$0xff]  ;;  %v182_v24 = vld [vmem:[%s469_s20 + $0x40] sm:$0xff] }
  0x13   : > { %v252_v16 = vadd.f32 %v474_v1, %v213_v5  ;;  %v253_v17 = vadd.f32 %v474_v1, %v214_v6  ;;  %v254_v18 = vadd.f32 %v474_v1, %v215_v7  ;;  %v219_v19 = vmul.f32 %v464_v0, %v180_v14  ;;  %v183_v25 = vld [vmem:[%s469_s20 + $0x48] sm:$0xff]  ;;  %v184_v26 = vld [vmem:[%s469_s20 + $0x50] sm:$0xff]  ;;  %v185_v31 = vld [vmem:[%s469_s20 + $0x58] sm:$0xff] }
  0x14   : > { %v255_v20 = vadd.f32 %v474_v1, %v216_v11  ;;  %v256_v21 = vadd.f32 %v474_v1, %v217_v12  ;;  %v257_v22 = vadd.f32 %v474_v1, %v218_v13  ;;  %v220_v23 = vmul.f32 %v464_v0, %v181_v15  ;;  %v186_v32 = vld [vmem:[%s469_s20 + $0x60] sm:$0xff]  ;;  %v187_v33 = vld [vmem:[%s469_s20 + $0x68] sm:$0xff]  ;;  %v188_v38 = vld [vmem:[%s469_s20 + $0x70] sm:$0xff] }
  0x15   : > { %v284_v27 = vmax.f32 %v252_v16, 0.0  ;;  %v285_v28 = vmax.f32 %v253_v17, 0.0  ;;  %v286_v29 = vmax.f32 %v254_v18, 0.0  ;;  %v258_v30 = vadd.f32 %v474_v1, %v219_v19  ;;  %v189_v43 = vld [vmem:[%s469_s20 + $0x78] sm:$0xff]  ;;  %v190_v56 = vld [vmem:[%s469_s20 + $0x80] sm:$0xff]  ;;  %v191_v57 = vld [vmem:[%s469_s20 + $0x88] sm:$0xff] }
  0x16   : > { %v287_v34 = vmax.f32 %v255_v20, 0.0  ;;  %v288_v35 = vmax.f32 %v256_v21, 0.0  ;;  %v289_v36 = vmax.f32 %v257_v22, 0.0  ;;  %v259_v37 = vadd.f32 %v474_v1, %v220_v23  ;;  %v192_v58 = vld [vmem:[%s469_s20 + $0x90] sm:$0xff]  ;;  %v193_v63 = vld [vmem:[%s469_s20 + $0x98] sm:$0xff]  ;;  %v194_v2 = vld [vmem:[%s469_s20 + $0xa0] sm:$0xff] }
  0x17   : > { %316 = vst [vmem:[%s497_s25] sm:$0xff] %v284_v27  ;;  %317 = vst [vmem:[%s497_s25 + $0x8] sm:$0xff] %v285_v28  ;;  %v290_v39 = vmax.f32 %v258_v30, 0.0  ;;  %v221_v40 = vmul.f32 %v464_v0, %v182_v24  ;;  %v222_v41 = vmul.f32 %v464_v0, %v183_v25  ;;  %v223_v42 = vmul.f32 %v464_v0, %v184_v26  ;;  %v195_v3 = vld [vmem:[%s469_s20 + $0xa8] sm:$0xff]  ;;  %v196_v8 = vld [vmem:[%s469_s20 + $0xb0] sm:$0xff] }
  0x18   : > { %318 = vst [vmem:[%s497_s25 + $0x10] sm:$0xff] %v286_v29  ;;  %319 = vst [vmem:[%s497_s25 + $0x18] sm:$0xff] %v287_v34  ;;  %v291_v44 = vmax.f32 %v259_v37, 0.0  ;;  %v224_v45 = vmul.f32 %v464_v0, %v185_v31  ;;  %v225_v46 = vmul.f32 %v464_v0, %v186_v32  ;;  %v226_v47 = vmul.f32 %v464_v0, %v187_v33  ;;  %v197_v13 = vld [vmem:[%s469_s20 + $0xb8] sm:$0xff]  ;;  %v198_v26 = vld [vmem:[%s469_s20 + $0xc0] sm:$0xff] }
  0x19   : > { %320 = vst [vmem:[%s497_s25 + $0x20] sm:$0xff] %v288_v35  ;;  %321 = vst [vmem:[%s497_s25 + $0x28] sm:$0xff] %v289_v36  ;;  %v260_v48 = vadd.f32 %v474_v1, %v221_v40  ;;  %v261_v49 = vadd.f32 %v474_v1, %v222_v41  ;;  %v262_v50 = vadd.f32 %v474_v1, %v223_v42  ;;  %v199_v27 = vld [vmem:[%s469_s20 + $0xc8] sm:$0xff]  ;;  %v200_v28 = vld [vmem:[%s469_s20 + $0xd0] sm:$0xff] }
  0x1a   : > { %322 = vst [vmem:[%s497_s25 + $0x30] sm:$0xff] %v290_v39  ;;  %v227_v51 = vmul.f32 %v464_v0, %v188_v38  ;;  %323 = vst [vmem:[%s497_s25 + $0x38] sm:$0xff] %v291_v44  ;;  %v263_v52 = vadd.f32 %v474_v1, %v224_v45  ;;  %v264_v53 = vadd.f32 %v474_v1, %v225_v46  ;;  %v201_v33 = vld [vmem:[%s469_s20 + $0xd8] sm:$0xff]  ;;  %v202_v34 = vld [vmem:[%s469_s20 + $0xe0] sm:$0xff] }
  0x1b   : > { %v265_v54 = vadd.f32 %v474_v1, %v226_v47  ;;  %v228_v55 = vmul.f32 %v464_v0, %v189_v43  ;;  %v292_v59 = vmax.f32 %v260_v48, 0.0  ;;  %v293_v60 = vmax.f32 %v261_v49, 0.0  ;;  %v203_v35 = vld [vmem:[%s469_s20 + $0xe8] sm:$0xff]  ;;  %v204_v40 = vld [vmem:[%s469_s20 + $0xf0] sm:$0xff]  ;;  %v205_v45 = vld [vmem:[%s469_s20 + $0xf8] sm:$0xff] }
  0x1c   : > { %v294_v61 = vmax.f32 %v262_v50, 0.0  ;;  %v266_v62 = vadd.f32 %v474_v1, %v227_v51  ;;  %v295_v4 = vmax.f32 %v263_v52, 0.0  ;;  %v296_v5 = vmax.f32 %v264_v53, 0.0 }
  0x1d   : > { %v297_v6 = vmax.f32 %v265_v54, 0.0  ;;  %v267_v7 = vadd.f32 %v474_v1, %v228_v55  ;;  %324 = vst [vmem:[%s497_s25 + $0x40] sm:$0xff] %v292_v59  ;;  %325 = vst [vmem:[%s497_s25 + $0x48] sm:$0xff] %v293_v60  ;;  %v229_v10 = vmul.f32 %v464_v0, %v190_v56  ;;  %v230_v11 = vmul.f32 %v464_v0, %v191_v57 }
  0x1e   : > { %326 = vst [vmem:[%s497_s25 + $0x50] sm:$0xff] %v294_v61  ;;  %v298_v9 = vmax.f32 %v266_v62, 0.0  ;;  %v231_v12 = vmul.f32 %v464_v0, %v192_v58  ;;  %327 = vst [vmem:[%s497_s25 + $0x58] sm:$0xff] %v295_v4  ;;  %v232_v15 = vmul.f32 %v464_v0, %v193_v63  ;;  %v233_v16 = vmul.f32 %v464_v0, %v194_v2 }
  0x1f   : > { %328 = vst [vmem:[%s497_s25 + $0x60] sm:$0xff] %v296_v5  ;;  %329 = vst [vmem:[%s497_s25 + $0x68] sm:$0xff] %v297_v6  ;;  %v299_v14 = vmax.f32 %v267_v7, 0.0  ;;  %v234_v17 = vmul.f32 %v464_v0, %v195_v3  ;;  %v268_v18 = vadd.f32 %v474_v1, %v229_v10  ;;  %v269_v19 = vadd.f32 %v474_v1, %v230_v11 }
  0x20   : > { %330 = vst [vmem:[%s497_s25 + $0x70] sm:$0xff] %v298_v9  ;;  %v270_v20 = vadd.f32 %v474_v1, %v231_v12  ;;  %v235_v21 = vmul.f32 %v464_v0, %v196_v8  ;;  %v271_v22 = vadd.f32 %v474_v1, %v232_v15  ;;  %v272_v23 = vadd.f32 %v474_v1, %v233_v16 }
  0x21   : > { %331 = vst [vmem:[%s497_s25 + $0x78] sm:$0xff] %v299_v14  ;;  %v273_v24 = vadd.f32 %v474_v1, %v234_v17  ;;  %v236_v25 = vmul.f32 %v464_v0, %v197_v13  ;;  %v300_v29 = vmax.f32 %v268_v18, 0.0  ;;  %v301_v30 = vmax.f32 %v269_v19, 0.0 }
  0x22   : > { %v302_v31 = vmax.f32 %v270_v20, 0.0  ;;  %v274_v32 = vadd.f32 %v474_v1, %v235_v21  ;;  %v303_v36 = vmax.f32 %v271_v22, 0.0  ;;  %v304_v37 = vmax.f32 %v272_v23, 0.0 }
  0x23   : > { %v305_v38 = vmax.f32 %v273_v24, 0.0  ;;  %v275_v39 = vadd.f32 %v474_v1, %v236_v25  ;;  %332 = vst [vmem:[%s497_s25 + $0x80] sm:$0xff] %v300_v29  ;;  %333 = vst [vmem:[%s497_s25 + $0x88] sm:$0xff] %v301_v30  ;;  %v237_v42 = vmul.f32 %v464_v0, %v198_v26  ;;  %v238_v43 = vmul.f32 %v464_v0, %v199_v27 }
  0x24   : > { %334 = vst [vmem:[%s497_s25 + $0x90] sm:$0xff] %v302_v31  ;;  %v306_v41 = vmax.f32 %v274_v32, 0.0  ;;  %v239_v44 = vmul.f32 %v464_v0, %v200_v28  ;;  %335 = vst [vmem:[%s497_s25 + $0x98] sm:$0xff] %v303_v36  ;;  %v240_v47 = vmul.f32 %v464_v0, %v201_v33  ;;  %v241_v48 = vmul.f32 %v464_v0, %v202_v34 }
  0x25   : > { %336 = vst [vmem:[%s497_s25 + $0xa0] sm:$0xff] %v304_v37  ;;  %337 = vst [vmem:[%s497_s25 + $0xa8] sm:$0xff] %v305_v38  ;;  %v307_v46 = vmax.f32 %v275_v39, 0.0  ;;  %v242_v49 = vmul.f32 %v464_v0, %v203_v35  ;;  %v276_v50 = vadd.f32 %v474_v1, %v237_v42  ;;  %v277_v51 = vadd.f32 %v474_v1, %v238_v43 }
  0x26   : > { %338 = vst [vmem:[%s497_s25 + $0xb0] sm:$0xff] %v306_v41  ;;  %v278_v52 = vadd.f32 %v474_v1, %v239_v44  ;;  %v243_v53 = vmul.f32 %v464_v0, %v204_v40  ;;  %v279_v54 = vadd.f32 %v474_v1, %v240_v47  ;;  %v280_v55 = vadd.f32 %v474_v1, %v241_v48 }
  0x27   : > { %339 = vst [vmem:[%s497_s25 + $0xb8] sm:$0xff] %v307_v46  ;;  %v281_v56 = vadd.f32 %v474_v1, %v242_v49  ;;  %v244_v57 = vmul.f32 %v464_v0, %v205_v45  ;;  %v308_v58 = vmax.f32 %v276_v50, 0.0  ;;  %v309_v59 = vmax.f32 %v277_v51, 0.0 }
  0x28   : > { %v310_v60 = vmax.f32 %v278_v52, 0.0  ;;  %v282_v61 = vadd.f32 %v474_v1, %v243_v53  ;;  %v311_v62 = vmax.f32 %v279_v54, 0.0  ;;  %v312_v63 = vmax.f32 %v280_v55, 0.0 }
  0x29   : > { %v313_v2 = vmax.f32 %v281_v56, 0.0  ;;  %v283_v3 = vadd.f32 %v474_v1, %v244_v57  ;;  %340 = vst [vmem:[%s497_s25 + $0xc0] sm:$0xff] %v308_v58  ;;  %341 = vst [vmem:[%s497_s25 + $0xc8] sm:$0xff] %v309_v59 }
  0x2a   : > { %342 = vst [vmem:[%s497_s25 + $0xd0] sm:$0xff] %v310_v60  ;;  %v314_v4 = vmax.f32 %v282_v61, 0.0  ;;  %343 = vst [vmem:[%s497_s25 + $0xd8] sm:$0xff] %v311_v62 }
  0x2b   : > { %344 = vst [vmem:[%s497_s25 + $0xe0] sm:$0xff] %v312_v63  ;;  %345 = vst [vmem:[%s497_s25 + $0xe8] sm:$0xff] %v313_v2  ;;  %v315_v0 = vmax.f32 %v283_v3, 0.0 }
  0x2c   : > { %346 = vst [vmem:[%s497_s25 + $0xf0] sm:$0xff] %v314_v4 }
  0x2d   : > { %347 = vst [vmem:[%s497_s25 + $0xf8] sm:$0xff] %v315_v0 }
  0x2e PF: > { %s13_s12 = sadd.s32 1, %s431_s12  }
  0x2f   : > { %p10_p4 = scmp.ge.s32.totalorder %s13_s12, 4  }
  0x31   :  { %12 = sbr.rel (!%p10_p4) target bundleno = 1 (0x1), region = 62 }

// kernel: basic_block_forward.4
= control target key start
LH: loop header
LB: loop body
LE: loop exit
PB: predicated region body
PF: predicated region fallthrough
CT: control target
= control target key end

     0   :  { %s4683_s12 = smov 0   ;;  %s4685_s13 = smov 0   ;;  %s5863_s0 = inlined_call_operand.vmem [shape: bf16[3,32,18,128], index: 0, kind: input, shape index: {}]   ;;  %s5864_s1 = inlined_call_operand.vmem [shape: bf16[3,3,128,128], index: 1, kind: input, shape index: {}]   ;;  %s5865_s2 = inlined_call_operand.vmem [shape: f32[512,128], index: 2, kind: output, shape index: {0}]   ;;  %s5866_s3 = inlined_call_operand.vmem [shape: f32[4,2,128], index: 3, kind: output, shape index: {1}]  }
   0x1   :  { %s4687_s14 = smov 0  }
   0x2 LB: > { %s4699_s15 = sadd.s32 4294967295, %s4661_s14   ;;  %s4702_s16 = sadd.s32 1, %s4661_s14   ;;  %s4661_s14 = sphi %s4687_s14, %s5882_s14   ;;  %s4657_s13 = sphi %s4685_s13, %s5881_s13   ;;  %s4653_s12 = sphi %s4683_s12, %s5880_s12  }
   0x3   : > { %s18_s17 = ssub.s32 %s4661_s14, %s4702_s16  ;;  %s21_s18 = sadd.s32 1, %s4657_s13 }
   0x4   : > { %p19_p0 = scmp.eq.s32.totalorder %s18_s17, 0  ;;  %p28_p1 = scmp.ne.s32.totalorder %s4657_s13, %s4653_s12 }
   0x5   : > { %p29_p2 = scmp.eq.s32.totalorder %s4661_s14, 0  ;;  %p3534_p4 = scmp.ge.s32.totalorder %s4661_s14, 4 }
   0x6   : > { %s4711_s19 = scalar_select %p19_p0, %s4657_s13, %s21_s18  }
   0x7   : > { %p30_p3 = por %p29_p2, %p28_p1  ;;  %130 = sbr.rel (%p3534_p4) target bundleno = 37 (0x25), region = 20 }
   0xe   : > { %133 = sbr.rel (!%p30_p3) target bundleno = 37 (0x25), region = 24  ;;  %s135_s20 = sand.u32 (%p30_p3), 1, %s4657_s13  }
   0xf   : > { %s4513_s21 = smul.u32 (%p30_p3), 96, %s4661_s14 }
  0x10   : > { %s4512_s22 = smul.u32 (%p30_p3), 288, %s135_s20 }
  0x11   : > { %s4719_s25 = scalar_lea.vmem (%p30_p3), %s5863_s0, %s4513_s21 }
  0x12   : > { %v157_v0 = vld [vmem:[%s4719_s25] sm:$0xff] (%p30_p3)   ;;  %v161_v1 = vld [vmem:[%s4719_s25 + $0x8] sm:$0xff] (%p30_p3)   ;;  %v165_v2 = vld [vmem:[%s4719_s25 + $0x10] sm:$0xff] (%p30_p3)   ;;  %s4724_s26 = scalar_lea.vmem (%p30_p3), [#allocation2], %s4512_s22 }
  0x13   : > { %158 = vst [vmem:[%s4724_s26] sm:$0xff] (%p30_p3), %v157_v0   ;;  %162 = vst [vmem:[%s4724_s26 + $0x8] sm:$0xff] (%p30_p3), %v161_v1   ;;  %v169_v3 = vld [vmem:[%s4719_s25 + $0x18] sm:$0xff] (%p30_p3)   ;;  %v173_v4 = vld [vmem:[%s4719_s25 + $0x20] sm:$0xff] (%p30_p3)  }
  0x14   : > { %166 = vst [vmem:[%s4724_s26 + $0x10] sm:$0xff] (%p30_p3), %v165_v2   ;;  %v177_v5 = vld [vmem:[%s4719_s25 + $0x28] sm:$0xff] (%p30_p3)   ;;  %170 = vst [vmem:[%s4724_s26 + $0x18] sm:$0xff] (%p30_p3), %v169_v3   ;;  %v181_v6 = vld [vmem:[%s4719_s25 + $0x30] sm:$0xff] (%p30_p3)  }
  0x15   : > { %174 = vst [vmem:[%s4724_s26 + $0x20] sm:$0xff] %v173_v4   ;;  %178 = vst [vmem:[%s4724_s26 + $0x28] sm:$0xff] %v177_v5   ;;  %v185_v7 = vld [vmem:[%s4719_s25 + $0x38] sm:$0xff]   ;;  %v189_v8 = vld [vmem:[%s4719_s25 + $0x40] sm:$0xff]  }
  0x16   : > { %182 = vst [vmem:[%s4724_s26 + $0x30] sm:$0xff] %v181_v6   ;;  %186 = vst [vmem:[%s4724_s26 + $0x38] sm:$0xff] %v185_v7   ;;  %v193_v9 = vld [vmem:[%s4719_s25 + $0x48] sm:$0xff]   ;;  %v197_v10 = vld [vmem:[%s4719_s25 + $0x50] sm:$0xff]  }
  0x17   : > { %190 = vst [vmem:[%s4724_s26 + $0x40] sm:$0xff] %v189_v8   ;;  %v201_v11 = vld [vmem:[%s4719_s25 + $0x58] sm:$0xff]   ;;  %194 = vst [vmem:[%s4724_s26 + $0x48] sm:$0xff] %v193_v9   ;;  %v205_v12 = vld [vmem:[%s4719_s25 + $0x180] sm:$0xff]  }
  0x18   : > { %198 = vst [vmem:[%s4724_s26 + $0x50] sm:$0xff] %v197_v10   ;;  %202 = vst [vmem:[%s4724_s26 + $0x58] sm:$0xff] %v201_v11   ;;  %v209_v13 = vld [vmem:[%s4719_s25 + $0x188] sm:$0xff]   ;;  %v213_v14 = vld [vmem:[%s4719_s25 + $0x190] sm:$0xff]  }
  0x19   : > { %206 = vst [vmem:[%s4724_s26 + $0x60] sm:$0xff] %v205_v12   ;;  %210 = vst [vmem:[%s4724_s26 + $0x68] sm:$0xff] %v209_v13   ;;  %v217_v15 = vld [vmem:[%s4719_s25 + $0x198] sm:$0xff]   ;;  %v221_v16 = vld [vmem:[%s4719_s25 + $0x1a0] sm:$0xff]  }
  0x1a   : > { %214 = vst [vmem:[%s4724_s26 + $0x70] sm:$0xff] %v213_v14   ;;  %v225_v17 = vld [vmem:[%s4719_s25 + $0x1a8] sm:$0xff]   ;;  %218 = vst [vmem:[%s4724_s26 + $0x78] sm:$0xff] %v217_v15   ;;  %v229_v18 = vld [vmem:[%s4719_s25 + $0x1b0] sm:$0xff]  }
  0x1b   : > { %222 = vst [vmem:[%s4724_s26 + $0x80] sm:$0xff] %v221_v16   ;;  %226 = vst [vmem:[%s4724_s26 + $0x88] sm:$0xff] %v225_v17   ;;  %v233_v19 = vld [vmem:[%s4719_s25 + $0x1b8] sm:$0xff]   ;;  %v237_v20 = vld [vmem:[%s4719_s25 + $0x1c0] sm:$0xff]  }
  0x1c   : > { %230 = vst [vmem:[%s4724_s26 + $0x90] sm:$0xff] %v229_v18   ;;  %234 = vst [vmem:[%s4724_s26 + $0x98] sm:$0xff] %v233_v19   ;;  %v241_v21 = vld [vmem:[%s4719_s25 + $0x1c8] sm:$0xff]   ;;  %v245_v22 = vld [vmem:[%s4719_s25 + $0x1d0] sm:$0xff]  }
  0x1d   : > { %238 = vst [vmem:[%s4724_s26 + $0xa0] sm:$0xff] %v237_v20   ;;  %v249_v23 = vld [vmem:[%s4719_s25 + $0x1d8] sm:$0xff]   ;;  %242 = vst [vmem:[%s4724_s26 + $0xa8] sm:$0xff] %v241_v21   ;;  %v253_v24 = vld [vmem:[%s4719_s25 + $0x300] sm:$0xff]  }
  0x1e   : > { %246 = vst [vmem:[%s4724_s26 + $0xb0] sm:$0xff] %v245_v22   ;;  %250 = vst [vmem:[%s4724_s26 + $0xb8] sm:$0xff] %v249_v23   ;;  %v257_v25 = vld [vmem:[%s4719_s25 + $0x308] sm:$0xff]   ;;  %v261_v26 = vld [vmem:[%s4719_s25 + $0x310] sm:$0xff]  }
  0x1f   : > { %254 = vst [vmem:[%s4724_s26 + $0xc0] sm:$0xff] %v253_v24   ;;  %258 = vst [vmem:[%s4724_s26 + $0xc8] sm:$0xff] %v257_v25   ;;  %v265_v27 = vld [vmem:[%s4719_s25 + $0x318] sm:$0xff]   ;;  %v269_v28 = vld [vmem:[%s4719_s25 + $0x320] sm:$0xff]  }
  0x20   : > { %262 = vst [vmem:[%s4724_s26 + $0xd0] sm:$0xff] %v261_v26   ;;  %v273_v29 = vld [vmem:[%s4719_s25 + $0x328] sm:$0xff]   ;;  %266 = vst [vmem:[%s4724_s26 + $0xd8] sm:$0xff] %v265_v27   ;;  %v277_v30 = vld [vmem:[%s4719_s25 + $0x330] sm:$0xff]  }
  0x21   : > { %270 = vst [vmem:[%s4724_s26 + $0xe0] sm:$0xff] %v269_v28   ;;  %274 = vst [vmem:[%s4724_s26 + $0xe8] sm:$0xff] %v273_v29   ;;  %v281_v31 = vld [vmem:[%s4719_s25 + $0x338] sm:$0xff]   ;;  %v285_v32 = vld [vmem:[%s4719_s25 + $0x340] sm:$0xff]  }
  0x22   : > { %278 = vst [vmem:[%s4724_s26 + $0xf0] sm:$0xff] %v277_v30   ;;  %282 = vst [vmem:[%s4724_s26 + $0xf8] sm:$0xff] %v281_v31   ;;  %v289_v33 = vld [vmem:[%s4719_s25 + $0x348] sm:$0xff]   ;;  %v293_v34 = vld [vmem:[%s4719_s25 + $0x350] sm:$0xff]  }
  0x23   : > { %286 = vst [vmem:[%s4724_s26 + $0x100] sm:$0xff] %v285_v32   ;;  %v297_v35 = vld [vmem:[%s4719_s25 + $0x358] sm:$0xff]   ;;  %290 = vst [vmem:[%s4724_s26 + $0x108] sm:$0xff] %v289_v33  }
  0x24   : > { %294 = vst [vmem:[%s4724_s26 + $0x110] sm:$0xff] %v293_v34   ;;  %298 = vst [vmem:[%s4724_s26 + $0x118] sm:$0xff] %v297_v35  }
  0x25 PF: > { %p3538_p5 = scmp.ge.s32.totalorder %s4661_s14, 1  ;;  %p466_p6 = scmp.lt.s32.totalorder %s4661_s14, 5 }
  0x27   : > { %p467_p7 = pnand %p3538_p5, %p466_p6 }
  0x29   : > { %470 = sbr.rel (%p467_p7) target bundleno = 500 (0x1f4), region = 65 }
  0x30   : > { %v4539_v36 = vld [vmem:[%s5864_s1 + $0x40] sm:$0xff]   ;;  %v4541_v38 = vld [vmem:[%s5864_s1 + $0x48] sm:$0xff]   ;;  %v4543_v40 = vld [vmem:[%s5864_s1 + $0x50] sm:$0xff]   ;;  %s473_s14 = sand.u32 1, %s4653_s12   ;;  %vm552_vm0 = vsmask.f32 3328 }
  0x31   : > { %v4540_v37 = vld [vmem:[%s5864_s1 + $0x100] sm:$0xff]   ;;  %4080 = vmatprep.subr.bf16.mxu1 %v4539_v36  ;;  %v4542_v39 = vld [vmem:[%s5864_s1 + $0x108] sm:$0xff]   ;;  %v4544_v41 = vld [vmem:[%s5864_s1 + $0x110] sm:$0xff]   ;;  %s4514_s22 = smul.u32 288, %s473_s14  ;;  %vm553_vm1 = vsmask.f32 7440 }
  0x32   : > { %4208 = vmatprep.subr.bf16.mxu0 %v4540_v37  ;;  %4081 = vmatpush3.bf16.msra.mxu1 %v4539_v36  ;;  %v4545_v42 = vld [vmem:[%s5864_s1 + $0x58] sm:$0xff]   ;;  %v4547_v44 = vld [vmem:[%s5864_s1 + $0x60] sm:$0xff]   ;;  %v4549_v46 = vld [vmem:[%s5864_s1 + $0x68] sm:$0xff]   ;;  %vm1158_vm3 = vcmask 1042432   ;;  %vm1159_vm4 = vcmask 1046532   ;;  %p507_p9 = scmp.lt.s32.totalorder %s4699_s15, 3 }
  0x33   : > { %4209 = vmatpush3.bf16.msra.mxu0 %v4540_v37  ;;  %4082 = vmatprep.subr.bf16.mxu1 %v4541_v38  ;;  %v4546_v43 = vld [vmem:[%s5864_s1 + $0x118] sm:$0xff]   ;;  %v4548_v45 = vld [vmem:[%s5864_s1 + $0x120] sm:$0xff]   ;;  %v4550_v47 = vld [vmem:[%s5864_s1 + $0x128] sm:$0xff]   ;;  %s4834_s30 = scalar_lea.vmem [#allocation2], %s4514_s22  ;;  %vm3435_vm6 = vcmask 1040384  }
  0x34   : > { %4210 = vmatprep.subr.bf16.mxu0 %v4542_v39  ;;  %v4837_v48 = vld [vmem:[%s4834_s30] sm:$0xf]  ;;  %v4840_v49 = vld [vmem:[%s4834_s30 + $0x4] sm:$0xf]  ;;  %v4843_v50 = vld [vmem:[%s4834_s30 + $0x8] sm:$0x1] }
  0x35   : > { %v556_v51 = vshrl.u32 %v4837_v48, 16  ;;  %v559_v52 = vshll.u32 %v4837_v48, 16  ;;  %v565_v53 = vshll.u32 %v4840_v49, 16  ;;  %v569_v54 = vshrl.u32 %v4840_v49, 16  ;;  %v3678_v56 = vld [vmem:[%s4834_s30 + $0x60] sm:$0xf]  ;;  %vm4873_vm2 = vmor %vm552_vm0, %vm553_vm1 }
  0x36   : > { %4083 = vmatpush3.bf16.msra.mxu1 %v4541_v38  ;;  %v575_v55 = vshll.u32 %v4843_v50, 16  ;;  %v4852_v59 = vld [vmem:[%s4834_s30 + $0x64] sm:$0xf]  ;;  %v4855_v60 = vld [vmem:[%s4834_s30 + $0x68] sm:$0x1]  ;;  %v4551_v61 = vld [vmem:[%s5864_s1 + $0x70] sm:$0xff]  }
  0x37   : > { %4211 = vmatpush3.bf16.msra.mxu0 %v4542_v39  ;;  %4084 = vmatprep.subr.bf16.mxu1 %v4543_v40  ;;  %v558_v57 = vrot.slane %v556_v51, 4  ;;  %v561_v58 = vrot.slane %v559_v52, 5  ;;  %v567_v62 = vrot.slane %v565_v53, 5  ;;  %v571_v63 = vrot.slane %v569_v54, 4  ;;  %v4552_v1 = vld [vmem:[%s5864_s1 + $0x130] sm:$0xff]   ;;  %v4553_v7 = vld [vmem:[%s5864_s1 + $0x78] sm:$0xff]   ;;  %vm5170_vm5 = vmor %vm1158_vm3, %vm1159_vm4 }
  0x38   : > { %4212 = vmatprep.subr.bf16.mxu0 %v4544_v41  ;;  %v1695_v0 = vshrl.u32 %v3678_v56, 16  ;;  %v1698_v3 = vshll.u32 %v3678_v56, 16  ;;  %v1704_v4 = vshll.u32 %v4852_v59, 16  ;;  %v1708_v5 = vshrl.u32 %v4852_v59, 16  ;;  %v4866_v6 = vld [vmem:[%s4834_s30 + $0xc] sm:$0xf] }
  0x39   : > { %v562_v2 = vor.u32 %v561_v58, %v558_v57  ;;  %v572_v9 = vor.u32 %v571_v63, %v567_v62  ;;  %v577_v10 = vrot.slane %v575_v55, 5  ;;  %v1714_v12 = vshll.u32 %v4855_v60, 16  ;;  %v4879_v13 = vld [vmem:[%s4834_s30 + $0x10] sm:$0xf]  ;;  %v4554_v22 = vld [vmem:[%s5864_s1 + $0x138] sm:$0xff]   ;;  %v4555_v38 = vld [vmem:[%s5864_s1] sm:$0xff]  }
  0x3a   : > { %4085 = vmatpush3.bf16.msra.mxu1 %v4543_v40  ;;  %v1697_v11 = vrot.slane %v1695_v0, 4  ;;  %v1700_v15 = vrot.slane %v1698_v3, 5  ;;  %v1706_v16 = vrot.slane %v1704_v4, 5  ;;  %v1710_v17 = vrot.slane %v1708_v5, 4  ;;  %v4889_v26 = vld [vmem:[%s4834_s30 + $0x14] sm:$0x1] }
  0x3b   : > { %4213 = vmatpush3.bf16.msra.mxu0 %v4544_v41  ;;  %4086 = vmatprep.subr.bf16.mxu1 %v4545_v42  ;;  %v563_v14 = vrot.slane %v562_v2, 4  ;;  %v573_v18 = vrot.slane %v572_v9, 4  ;;  %v1716_v19 = vrot.slane %v1714_v12, 5  ;;  %v580_v20 = vshrl.u32 %v4866_v6, 16  ;;  %v3681_v28 = vld [vmem:[%s4834_s30 + $0x6c] sm:$0xf] }
  0x3c   : > { %4214 = vmatprep.subr.bf16.mxu0 %v4546_v43  ;;  %v583_v21 = vshll.u32 %v4866_v6, 16  ;;  %v1701_v24 = vor.u32 %v1700_v15, %v1697_v11  ;;  %v1711_v25 = vor.u32 %v1710_v17, %v1706_v16  ;;  %v589_v27 = vshll.u32 %v4879_v13, 16  ;;  %v4897_v33 = vld [vmem:[%s4834_s30 + $0x70] sm:$0xf]  ;;  %v4905_v39 = vld [vmem:[%s5864_s1 + $0x140] sm:$0xff]  }
  0x3d   : > { %v568_v23 = vsel %vm4873_vm2, %v563_v14, %v567_v62  ;;  %v578_v29 = vsel %vm4873_vm2, %v573_v18, %v577_v10  ;;  %v582_v30 = vrot.slane %v580_v20, 4  ;;  %v593_v32 = vshrl.u32 %v4879_v13, 16  ;;  %v4926_v5 = vld [vmem:[%s4834_s30 + $0x1c] sm:$0xf]  ;;  %v3684_v14 = vld [vmem:[%s4834_s30 + $0x78] sm:$0xf] }
  0x3e   : > { %4087 = vmatpush3.bf16.msra.mxu1 %v4545_v42  ;;  %v585_v31 = vrot.slane %v583_v21, 5  ;;  %v3558_v34 = vcombine.low %v568_v23, %v578_v29  ;;  %v1702_v35 = vrot.slane %v1701_v24, 4  ;;  %v1712_v36 = vrot.slane %v1711_v25, 4  ;;  %v4557_v18 = vld [vmem:[%s5864_s1 + $0x8] sm:$0xff]   ;;  %v4941_v24 = vld [vmem:[%s4834_s30 + $0x7c] sm:$0xf] }
  0x3f   : > { %4215 = vmatpush3.bf16.msra.mxu0 %v4546_v43  ;;  %4088 = vmatprep.subr.bf16.mxu1 %v4547_v44  ;;  %v591_v37 = vrot.slane %v589_v27, 5  ;;  %v595_v41 = vrot.slane %v593_v32, 4  ;;  %v599_v42 = vshll.u32 %v4889_v26, 16  ;;  %v4909_v43 = vld [vmem:[%s4834_s30 + $0x74] sm:$0x1]  ;;  %v1728_v57 = vshll.u32 %v4897_v33, 16 }
  0x40   : > { %4216 = vmatprep.subr.bf16.mxu0 %v4548_v45  ;;  %v586_v40 = vor.u32 %v585_v31, %v582_v30  ;;  %4096 = vmatprep.mubr.bf16.mxu1 %v3558_v34  ;;  %v1732_v58 = vshrl.u32 %v4897_v33, 16  ;;  %v613_v21 = vshll.u32 %v4926_v5, 16  ;;  %v4946_v29 = vld [vmem:[%s4834_s30 + $0x80] sm:$0x1]  ;;  %v1743_v30 = vshrl.u32 %v3684_v14, 16  ;;  %v4559_v31 = vld [vmem:[%s5864_s1 + $0x10] sm:$0xff]  }
  0x41   : > { %v596_v53 = vor.u32 %v595_v41, %v591_v37  ;;  %v601_v54 = vrot.slane %v599_v42, 5  ;;  %v1730_v3 = vrot.slane %v1728_v57, 5  ;;  %v4558_v32 = vld [vmem:[%s5864_s1 + $0x148] sm:$0xff]  }
  0x42   : > { %4089 = vmatpush3.bf16.msra.mxu1 %v4547_v44  ;;  %v1707_v44 = vsel %vm4873_vm2, %v1702_v35, %v1706_v16  ;;  %v587_v52 = vrot.slane %v586_v40, 4  ;;  %v1734_v4 = vrot.slane %v1732_v58, 4  ;;  %v615_v34 = vrot.slane %v613_v21, 5  ;;  %v4955_v40 = vld [vmem:[%s4834_s30 + $0x24] sm:$0xf] }
  0x43   : > { %4217 = vmatpush3.bf16.msra.mxu0 %v4548_v45  ;;  %4090 = vmatprep.subr.bf16.mxu1 %v4549_v46  ;;  %v1717_v45 = vsel %vm4873_vm2, %v1712_v36, %v1716_v19  ;;  %v597_v0 = vrot.slane %v596_v53, 4  ;;  %v4965_v53 = vld [vmem:[%s4834_s30 + $0x2c] sm:$0x1]  ;;  %v628_v57 = vshrl.u32 %v4955_v40, 16  ;;  %v3687_v58 = vld [vmem:[%s4834_s30 + $0x84] sm:$0xf] }
  0x44   : > { %4218 = vmatprep.subr.bf16.mxu0 %v4550_v47  ;;  %v3718_v51 = vcombine.low %v1707_v44, %v1717_v45  ;;  %v592_v63 = vsel %vm4873_vm2, %v587_v52, %v591_v37  ;;  %v1735_v17 = vor.u32 %v1734_v4, %v1730_v3  ;;  %v1746_v37 = vshll.u32 %v3684_v14, 16  ;;  %v4962_v52 = vld [vmem:[%s4834_s30 + $0x28] sm:$0xf]  ;;  %v4560_v4 = vld [vmem:[%s5864_s1 + $0x150] sm:$0xff]   ;;  %v4561_v14 = vld [vmem:[%s5864_s1 + $0x18] sm:$0xff]  }
  0x45   : > { %v602_v9 = vsel %vm4873_vm2, %v597_v0, %v601_v54  ;;  %v1745_v44 = vrot.slane %v1743_v30, 4  ;;  %v647_v21 = vshll.u32 %v4965_v53, 16  ;;  %v4562_v30 = vld [vmem:[%s5864_s1 + $0x158] sm:$0xff]  }
  0x46   : > { %4091 = vmatpush3.bf16.msra.mxu1 %v4549_v46  ;;  %v1719_v46 = vshrl.u32 %v3681_v28, 16  ;;  %4224 = vmatprep.mubr.bf16.mxu0 %v3718_v51  ;;  %v3559_v15 = vcombine.low %v592_v63, %v602_v9  ;;  %v1736_v27 = vrot.slane %v1735_v17, 4  ;;  %v1756_v51 = vshrl.u32 %v4941_v24, 16 }
  0x47   : > { %4219 = vmatpush3.bf16.msra.mxu0 %v4550_v47  ;;  %4092 = vmatprep.subr.bf16.mxu1 %v4551_v61  ;;  %v1722_v47 = vshll.u32 %v3681_v28, 16 }
  0x48   : > { %4220 = vmatprep.subr.bf16.mxu0 %v4552_v1  ;;  %v1721_v55 = vrot.slane %v1719_v46, 4 }
  0x49   : > { %v1724_v56 = vrot.slane %v1722_v47, 5  ;;  %v1748_v47 = vrot.slane %v1746_v37, 5 }
  0x4a   : > { %4093 = vmatpush3.bf16.msra.mxu1 %v4551_v61  ;;  %v4918_v61 = vld [vmem:[%s4834_s30 + $0x18] sm:$0xf] }
  0x4b   : > { %4221 = vmatpush3.bf16.msra.mxu0 %v4552_v1  ;;  %4094 = vmatprep.subr.bf16.mxu1 %v4553_v7  ;;  %v1738_v1 = vshll.u32 %v4909_v43, 16  ;;  %v1725_v2 = vor.u32 %v1724_v56, %v1721_v55  ;;  %v604_v12 = vshrl.u32 %v4918_v61, 16  ;;  %v607_v19 = vshll.u32 %v4918_v61, 16 }
  0x4c   : > { %4222 = vmatprep.subr.bf16.mxu0 %v4554_v22  ;;  %v1762_v56 = vshll.u32 %v4946_v29, 16  ;;  %v1749_v0 = vor.u32 %v1748_v47, %v1745_v44 }
  0x4d   : > { %v1740_v10 = vrot.slane %v1738_v1, 5  ;;  %v1726_v16 = vrot.slane %v1725_v2, 4  ;;  %v606_v20 = vrot.slane %v604_v12, 4  ;;  %v609_v28 = vrot.slane %v607_v19, 5 }
  0x4e   : > { %4095 = vmatpush3.bf16.msra.mxu1 %v4553_v7  ;;  %v546_v7 = vld [vmem:[%s4834_s30 + $0x20] sm:$0x1]  ;;  %v1758_v1 = vrot.slane %v1756_v51, 4  ;;  %v631_v2 = vshll.u32 %v4955_v40, 16  ;;  %v1764_v9 = vrot.slane %v1762_v56, 5  ;;  %v637_v12 = vshll.u32 %v4962_v52, 16 }
  0x4f   : > { %4223 = vmatpush3.bf16.msra.mxu0 %v4554_v22  ;;  %4112 = vmatprep.subr.bf16.mxu1 %v4555_v38  ;;  %v617_v22 = vshrl.u32 %v4926_v5, 16  ;;  %v623_v23 = vshll.u32 %v546_v7, 16  ;;  %v1731_v25 = vsel %vm4873_vm2, %v1726_v16, %v1730_v3  ;;  %v1741_v41 = vsel %vm4873_vm2, %v1736_v27, %v1740_v10  ;;  %v4972_v3 = vld [vmem:[%s4834_s30 + $0x88] sm:$0xf]  ;;  %v4991_v27 = vld [vmem:[%s4834_s30 + $0x8c] sm:$0x1] }
  0x50   : > { %4240 = vmatprep.subr.bf16.mxu0 %v4905_v39  ;;  %v610_v42 = vor.u32 %v609_v28, %v606_v20  ;;  %v3719_v45 = vcombine.low %v1731_v25, %v1741_v41  ;;  %v630_v10 = vrot.slane %v628_v57, 4  ;;  %v1750_v16 = vrot.slane %v1749_v0, 4  ;;  %v4998_v41 = vld [vmem:[%s4834_s30 + $0x30] sm:$0xf] }
  0x51   : > { %4097 = vmatmul.mubr.bf16.vlgmr.msra.gmra.mrb[0].mxu1 %v3559_v15  ;;  %v619_v35 = vrot.slane %v617_v22, 4  ;;  %v625_v36 = vrot.slane %v623_v23, 5  ;;  %v639_v19 = vrot.slane %v637_v12, 5  ;;  %v641_v20 = vshrl.u32 %v4962_v52, 16 }
  0x52   : > { %4113 = vmatpush3.bf16.msra.mxu1 %v4555_v38  ;;  %v1752_v38 = vshll.u32 %v4941_v24, 16  ;;  %v611_v54 = vrot.slane %v610_v42, 4  ;;  %4225 = vmatmul.mubr.bf16.vlgmr.msra.gmra.mrb[0].mxu0 %v3719_v45  ;;  %v1767_v28 = vshrl.u32 %v3687_v58, 16  ;;  %v1776_v37 = vshll.u32 %v4972_v3, 16  ;;  %v5004_v45 = vld [vmem:[%s4834_s30 + $0x34] sm:$0xf] }
  0x53   : > { %4114 = vmatprep.subr.bf16.mxu1 %v4557_v18  ;;  %v620_v46 = vor.u32 %v619_v35, %v615_v34  ;;  %4241 = vmatpush3.bf16.msra.mxu0 %v4905_v39  ;;  %v633_v39 = vrot.slane %v631_v2, 5  ;;  %v649_v35 = vrot.slane %v647_v21, 5  ;;  %v1786_v57 = vshll.u32 %v4991_v27, 16 }
  0x54   : > { %v1754_v55 = vrot.slane %v1752_v38, 5  ;;  %v616_v7 = vsel %vm4873_vm2, %v611_v54, %v615_v34  ;;  %4242 = vmatprep.subr.bf16.mxu0 %v4558_v32  ;;  %v643_v34 = vrot.slane %v641_v20, 4  ;;  %v1769_v38 = vrot.slane %v1767_v28, 4  ;;  %v5029_v20 = vld [vmem:[%s4834_s30 + $0x94] sm:$0xf] }
  0x55   : > { %v621_v63 = vrot.slane %v620_v46, 4  ;;  %v634_v25 = vor.u32 %v633_v39, %v630_v10  ;;  %v1778_v54 = vrot.slane %v1776_v37, 5  ;;  %v655_v2 = vshll.u32 %v4998_v41, 16  ;;  %v4567_v28 = vld [vmem:[%s5864_s1 + $0x30] sm:$0xff]  }
  0x56   : > { %4115 = vmatpush3.bf16.msra.mxu1 %v4557_v18  ;;  %v1759_v17 = vor.u32 %v1758_v1, %v1754_v55  ;;  %v1755_v22 = vsel %vm4873_vm2, %v1750_v16, %v1754_v55  ;;  %v644_v47 = vor.u32 %v643_v34, %v639_v19  ;;  %v5014_v1 = vld [vmem:[%s4834_s30 + $0x38] sm:$0x1]  ;;  %v1788_v12 = vrot.slane %v1786_v57, 5  ;;  %v3690_v16 = vld [vmem:[%s4834_s30 + $0x90] sm:$0xf] }
  0x57   : > { %4116 = vmatprep.subr.bf16.mxu1 %v4559_v31  ;;  %v626_v15 = vsel %vm4873_vm2, %v621_v63, %v625_v36  ;;  %4243 = vmatpush3.bf16.msra.mxu0 %v4558_v32  ;;  %v1770_v36 = vshll.u32 %v3687_v58, 16  ;;  %v635_v44 = vrot.slane %v634_v25, 4  ;;  %v4563_v32 = vld [vmem:[%s5864_s1 + $0x20] sm:$0xff]   ;;  %v652_v58 = vshrl.u32 %v4998_v41, 16 }
  0x58   : > { %v3560_v18 = vcombine.low %v616_v7, %v626_v15  ;;  %v1760_v23 = vrot.slane %v1759_v17, 4  ;;  %4244 = vmatprep.subr.bf16.mxu0 %v4560_v4  ;;  %v645_v63 = vrot.slane %v644_v47, 4  ;;  %v661_v7 = vshll.u32 %v5004_v45, 16  ;;  %v5050_v47 = vld [vmem:[%s4834_s30 + $0x40] sm:$0xf] }
  0x59   : > { %v1772_v51 = vrot.slane %v1770_v36, 5  ;;  %v640_v55 = vsel %vm4873_vm2, %v635_v44, %v639_v19  ;;  %v665_v15 = vshrl.u32 %v5004_v45, 16  ;;  %v671_v25 = vshll.u32 %v5014_v1, 16  ;;  %v5038_v36 = vld [vmem:[%s4834_s30 + $0x98] sm:$0x1]  ;;  %v4566_v44 = vld [vmem:[%s5864_s1 + $0x168] sm:$0xff]  }
  0x5a   : > { %4117 = vmatpush3.bf16.msra.mxu1 %v4559_v31  ;;  %4100 = vmatprep.mubr.bf16.mxu1 %v3560_v18  ;;  %v1765_v42 = vsel %vm4873_vm2, %v1760_v23, %v1764_v9  ;;  %v1780_v31 = vshrl.u32 %v4972_v3, 16  ;;  %v4565_v9 = vld [vmem:[%s5864_s1 + $0x28] sm:$0xff]   ;;  %v650_v17 = vsel %vm4873_vm2, %v645_v63, %v649_v35  ;;  %v657_v18 = vrot.slane %v655_v2, 5  ;;  %v5053_v57 = vld [vmem:[%s4834_s30 + $0x44] sm:$0x1] }
  0x5b   : > { %4118 = vmatprep.subr.bf16.mxu1 %v4561_v14  ;;  %v3720_v46 = vcombine.low %v1755_v22, %v1765_v42  ;;  %v1773_v0 = vor.u32 %v1772_v51, %v1769_v38  ;;  %4245 = vmatpush3.bf16.msra.mxu0 %v4560_v4  ;;  %v4564_v4 = vld [vmem:[%s5864_s1 + $0x160] sm:$0xff]   ;;  %v663_v19 = vrot.slane %v661_v7, 5  ;;  %v3561_v21 = vcombine.low %v640_v55, %v650_v17 }
  0x5c   : > { %v1782_v56 = vrot.slane %v1780_v31, 4  ;;  %4246 = vmatprep.subr.bf16.mxu0 %v4562_v30  ;;  %v667_v23 = vrot.slane %v665_v15, 4  ;;  %v1791_v37 = vshrl.u32 %v3690_v16, 16  ;;  %v1794_v42 = vshll.u32 %v3690_v16, 16  ;;  %5871 = vst [vmem:[#allocation3_spill] sm:$0xff] %v5053_v57 }
  0x5d   : > { %4228 = vmatprep.mubr.bf16.mxu0 %v3720_v46  ;;  %v1774_v39 = vrot.slane %v1773_v0, 4  ;;  %4101 = vmatmul.mubr.bf16.gmra.mrb[4].mxu1 %v3561_v21  ;;  %v5047_v46 = vld [vmem:[%s4834_s30 + $0x3c] sm:$0xf]  ;;  %v1804_v2 = vshrl.u32 %v5029_v20, 16  ;;  %v1810_v7 = vshll.u32 %v5038_v36, 16 }
  0x5e   : > { %4119 = vmatpush3.bf16.msra.mxu1 %v4561_v14  ;;  %v1783_v10 = vor.u32 %v1782_v56, %v1778_v54  ;;  %v654_v14 = vrot.slane %v652_v58, 4  ;;  %v668_v31 = vor.u32 %v667_v23, %v663_v19  ;;  %v1793_v55 = vrot.slane %v1791_v37, 4  ;;  %v4569_v58 = vld [vmem:[%s5864_s1 + $0x38] sm:$0xff]   ;;  %v5066_v17 = vld [vmem:[%s4834_s30 + $0xa0] sm:$0xf] }
  0x5f   : > { %4120 = vmatprep.subr.bf16.mxu1 %v4563_v32  ;;  %v1779_v34 = vsel %vm4873_vm2, %v1774_v39, %v1778_v54  ;;  %4247 = vmatpush3.bf16.msra.mxu0 %v4562_v30  ;;  %v1800_v30 = vshll.u32 %v5029_v20, 16  ;;  %v1796_v56 = vrot.slane %v1794_v42, 5  ;;  %v676_v15 = vshrl.u32 %v5047_v46, 16 }
  0x60   : > { %v1784_v22 = vrot.slane %v1783_v10, 4  ;;  %v658_v35 = vor.u32 %v657_v18, %v654_v14  ;;  %4248 = vmatprep.subr.bf16.mxu0 %v4564_v4  ;;  %v669_v63 = vrot.slane %v668_v31, 4  ;;  %v3693_v10 = vld [vmem:[%s4834_s30 + $0x9c] sm:$0xf]  ;;  %v679_v16 = vshll.u32 %v5047_v46, 16 }
  0x61   : > { %v1802_v0 = vrot.slane %v1800_v30, 5  ;;  %v1797_v14 = vor.u32 %v1796_v56, %v1793_v55  ;;  %v1806_v18 = vrot.slane %v1804_v2, 4  ;;  %v1812_v21 = vrot.slane %v1810_v7, 5 }
  0x62   : > { %4121 = vmatpush3.bf16.msra.mxu1 %v4563_v32  ;;  %v1789_v38 = vsel %vm4873_vm2, %v1784_v22, %v1788_v12  ;;  %v673_v32 = vrot.slane %v671_v25, 5  ;;  %v659_v54 = vrot.slane %v658_v35, 4  ;;  %v685_v22 = vshll.u32 %v5050_v47, 16 }
  0x63   : > { %4122 = vmatprep.subr.bf16.mxu1 %v4565_v9  ;;  %v3721_v51 = vcombine.low %v1779_v34, %v1789_v38  ;;  %4249 = vmatpush3.bf16.msra.mxu0 %v4564_v4  ;;  %v1798_v23 = vrot.slane %v1797_v14, 4  ;;  %v681_v25 = vrot.slane %v679_v16, 5  ;;  %v4568_v34 = vld [vmem:[%s5864_s1 + $0x170] sm:$0xff]   ;;  %v1807_v35 = vor.u32 %v1806_v18, %v1802_v0  ;;  %v5092_v14 = vld [vmem:[%s4834_s30 + $0x48] sm:$0xf] }
  0x64   : > { %v664_v12 = vsel %vm4873_vm2, %v659_v54, %v663_v19  ;;  %v674_v39 = vsel %vm4873_vm2, %v669_v63, %v673_v32  ;;  %v678_v19 = vrot.slane %v676_v15, 4  ;;  %4250 = vmatprep.subr.bf16.mxu0 %v4566_v44  ;;  %v687_v37 = vrot.slane %v685_v22, 5  ;;  %v5079_v32 = vld [vmem:[%s4834_s30 + $0xa4] sm:$0x1]  ;;  %v5098_v18 = vld [vmem:[%s4834_s30 + $0x4c] sm:$0xf] }
  0x65   : > { %4229 = vmatmul.mubr.bf16.gmra.mrb[4].mxu0 %v3721_v51  ;;  %v689_v42 = vshrl.u32 %v5050_v47, 16  ;;  %v695_v38 = vshll.u32 %v5053_v57, 16  ;;  %v1803_v4 = vsel %vm4873_vm2, %v1798_v23, %v1802_v0  ;;  %v1815_v30 = vshrl.u32 %v3693_v10, 16  ;;  %v5084_v54 = vld [vmem:[%s5864_s1 + $0x80] sm:$0xff]   ;;  %v4570_v0 = vld [vmem:[%s5864_s1 + $0x178] sm:$0xff]  }
  0x66   : > { %4123 = vmatpush3.bf16.msra.mxu1 %v4565_v9  ;;  %v3562_v9 = vcombine.low %v664_v12, %v674_v39  ;;  %v682_v31 = vor.u32 %v681_v25, %v678_v19  ;;  %v1818_v51 = vshll.u32 %v3693_v10, 16  ;;  %v1808_v55 = vrot.slane %v1807_v35, 4  ;;  %v5103_v25 = vld [vmem:[%s4834_s30 + $0x50] sm:$0x1]  ;;  %v3696_v35 = vld [vmem:[%s4834_s30 + $0xa8] sm:$0xf] }
  0x67   : > { %4124 = vmatprep.subr.bf16.mxu1 %v4567_v28  ;;  %v691_v56 = vrot.slane %v689_v42, 4  ;;  %v1824_v63 = vshll.u32 %v5066_v17, 16  ;;  %4251 = vmatpush3.bf16.msra.mxu0 %v4566_v44  ;;  %v1817_v7 = vrot.slane %v1815_v30, 4  ;;  %v1828_v12 = vshrl.u32 %v5066_v17, 16  ;;  %5872 = vst [vmem:[#allocation4_spill] sm:$0xff] %v5103_v25 }
  0x68   : > { %4104 = vmatprep.mubr.bf16.mxu1 %v3562_v9  ;;  %v683_v2 = vrot.slane %v682_v31, 4  ;;  %v1820_v10 = vrot.slane %v1818_v51, 5  ;;  %4252 = vmatprep.subr.bf16.mxu0 %v4568_v34  ;;  %v1813_v15 = vsel %vm4873_vm2, %v1808_v55, %v1812_v21  ;;  %v1834_v44 = vshll.u32 %v5079_v32, 16  ;;  %v5114_v51 = vld [vmem:[%s5864_s1 + $0x180] sm:$0xff]  }
  0x69   : > { %v692_v16 = vor.u32 %v691_v56, %v687_v37  ;;  %v1826_v39 = vrot.slane %v1824_v63, 5  ;;  %v3722_v22 = vcombine.low %v1803_v4, %v1813_v15  ;;  %v1830_v19 = vrot.slane %v1828_v12, 4 }
  0x6a   : > { %4125 = vmatpush3.bf16.msra.mxu1 %v4567_v28  ;;  %v697_v28 = vrot.slane %v695_v38, 5  ;;  %v688_v9 = vsel %vm4873_vm2, %v683_v2, %v687_v37  ;;  %v1821_v23 = vor.u32 %v1820_v10, %v1817_v7  ;;  %v1836_v21 = vrot.slane %v1834_v44, 5  ;;  %v5120_v2 = vld [vmem:[%s4834_s30 + $0xac] sm:$0xf]  ;;  %v5128_v44 = vld [vmem:[%s4834_s30 + $0x54] sm:$0xf] }
  0x6b   : > { %4126 = vmatprep.subr.bf16.mxu1 %v4569_v58  ;;  %v693_v42 = vrot.slane %v692_v16, 4  ;;  %v700_v38 = vshrl.u32 %v5092_v14, 16  ;;  %v703_v31 = vshll.u32 %v5092_v14, 16  ;;  %4253 = vmatpush3.bf16.msra.mxu0 %v4568_v34  ;;  %v1831_v37 = vor.u32 %v1830_v19, %v1826_v39  ;;  %v5125_v16 = vld [vmem:[%s4834_s30 + $0xb0] sm:$0x1] }
  0x6c   : > { %4232 = vmatprep.mubr.bf16.mxu0 %v3722_v22  ;;  %v709_v4 = vshll.u32 %v5098_v18, 16  ;;  %v713_v30 = vshrl.u32 %v5098_v18, 16  ;;  %4254 = vmatprep.subr.bf16.mxu0 %v4570_v0  ;;  %v719_v63 = vshll.u32 %v5103_v25, 16  ;;  %v5155_v25 = vld [vmem:[%s4834_s30 + $0xbc] sm:$0x1] }
  0x6d   : > { %v698_v55 = vsel %vm4873_vm2, %v693_v42, %v697_v28  ;;  %v702_v34 = vrot.slane %v700_v38, 4  ;;  %v705_v56 = vrot.slane %v703_v31, 5  ;;  %v1832_v12 = vrot.slane %v1831_v37, 4  ;;  %v5131_v42 = vld [vmem:[%s4834_s30 + $0x58] sm:$0xf] }
  0x6e   : > { %4127 = vmatpush3.bf16.msra.mxu1 %v4569_v58  ;;  %v1822_v58 = vrot.slane %v1821_v23, 4  ;;  %v3563_v7 = vcombine.low %v688_v9, %v698_v55  ;;  %v711_v15 = vrot.slane %v709_v4, 5  ;;  %v715_v23 = vrot.slane %v713_v30, 4 }
  0x6f   : > { %4144 = vmatprep.subr.bf16.mxu1 %v5084_v54  ;;  %v706_v22 = vor.u32 %v705_v56, %v702_v34  ;;  %v721_v19 = vrot.slane %v719_v63, 5  ;;  %v1839_v28 = vshrl.u32 %v3696_v35, 16  ;;  %4255 = vmatpush3.bf16.msra.mxu0 %v4570_v0  ;;  %v1837_v9 = vsel %vm4873_vm2, %v1832_v12, %v1836_v21  ;;  %v5140_v56 = vld [vmem:[%s4834_s30 + $0x5c] sm:$0x1] }
  0x70   : > { %v1827_v10 = vsel %vm4873_vm2, %v1822_v58, %v1826_v39  ;;  %4105 = vmatmul.mubr.bf16.gmra.mrb[8].mxu1 %v3563_v7  ;;  %v1842_v39 = vshll.u32 %v3696_v35, 16  ;;  %v1848_v38 = vshll.u32 %v5120_v2, 16  ;;  %v1852_v31 = vshrl.u32 %v5120_v2, 16  ;;  %4272 = vmatprep.subr.bf16.mxu0 %v5114_v51  ;;  %v3699_v35 = vld [vmem:[%s4834_s30 + $0xb4] sm:$0xf] }
  0x71   : > { %v3723_v58 = vcombine.low %v1827_v10, %v1837_v9  ;;  %v707_v37 = vrot.slane %v706_v22, 4  ;;  %v716_v4 = vor.u32 %v715_v23, %v711_v15  ;;  %v1841_v30 = vrot.slane %v1839_v28, 4 }
  0x72   : > { %v1844_v0 = vrot.slane %v1842_v39, 5  ;;  %v1850_v55 = vrot.slane %v1848_v38, 5  ;;  %v1854_v34 = vrot.slane %v1852_v31, 4  ;;  %v1858_v21 = vshll.u32 %v5125_v16, 16  ;;  %v5149_v39 = vld [vmem:[%s4834_s30 + $0xb8] sm:$0xf] }
  0x73   : > { %4233 = vmatmul.mubr.bf16.gmra.mrb[8].mxu0 %v3723_v58  ;;  %v712_v63 = vsel %vm4873_vm2, %v707_v37, %v711_v15  ;;  %v717_v7 = vrot.slane %v716_v4, 4  ;;  %v724_v10 = vshrl.u32 %v5128_v44, 16  ;;  %v727_v12 = vshll.u32 %v5128_v44, 16 }
  0x74   : > { %v1845_v22 = vor.u32 %v1844_v0, %v1841_v30  ;;  %v1855_v23 = vor.u32 %v1854_v34, %v1850_v55  ;;  %v1860_v28 = vrot.slane %v1858_v21, 5  ;;  %v733_v9 = vshll.u32 %v5131_v42, 16  ;;  %v3734_v30 = vld [vmem:[%s4834_s30 + $0x60] sm:$0xe] }
  0x75   : > { %v722_v38 = vsel %vm4873_vm2, %v717_v7, %v721_v19  ;;  %v726_v31 = vrot.slane %v724_v10, 4  ;;  %v729_v58 = vrot.slane %v727_v12, 5  ;;  %v737_v15 = vshrl.u32 %v5131_v42, 16 }
  0x76   : > { %v3564_v37 = vcombine.low %v712_v63, %v722_v38  ;;  %v1846_v4 = vrot.slane %v1845_v22, 4  ;;  %v1856_v62 = vrot.slane %v1855_v23, 4  ;;  %v735_v11 = vrot.slane %v733_v9, 5 }
  0x77   : > { %v730_v0 = vor.u32 %v729_v58, %v726_v31  ;;  %v739_v34 = vrot.slane %v737_v15, 4  ;;  %v743_v21 = vshll.u32 %v5140_v56, 16  ;;  %v1863_v57 = vshrl.u32 %v3699_v35, 16 }
  0x78   : > { %4108 = vmatprep.mubr.bf16.mxu1 %v3564_v37  ;;  %v1851_v19 = vsel %vm4873_vm2, %v1846_v4, %v1850_v55  ;;  %v1861_v7 = vsel %vm4873_vm2, %v1856_v62, %v1860_v28  ;;  %v1866_v10 = vshll.u32 %v3699_v35, 16  ;;  %v1872_v63 = vshll.u32 %v5149_v39, 16 }
  0x79   : > { %v3724_v12 = vcombine.low %v1851_v19, %v1861_v7  ;;  %v731_v22 = vrot.slane %v730_v0, 4  ;;  %v740_v23 = vor.u32 %v739_v34, %v735_v11  ;;  %v745_v9 = vrot.slane %v743_v21, 5  ;;  %v3735_v21 = vld [vmem:[%s4834_s30 + $0x6c] sm:$0xe]  ;;  %v3736_v19 = vld [vmem:[%s4834_s30 + $0x78] sm:$0xe] }
  0x7a   : > { %v1865_v38 = vrot.slane %v1863_v57, 4  ;;  %v1868_v31 = vrot.slane %v1866_v10, 5  ;;  %v1874_v58 = vrot.slane %v1872_v63, 5  ;;  %v1876_v15 = vshrl.u32 %v5149_v39, 16 }
  0x7b   : > { %4236 = vmatprep.mubr.bf16.mxu0 %v3724_v12  ;;  %v736_v55 = vsel %vm4873_vm2, %v731_v22, %v735_v11  ;;  %v741_v37 = vrot.slane %v740_v23, 4  ;;  %v1882_v62 = vshll.u32 %v5155_v25, 16  ;;  %v3742_v35 = vrot.slane %v3734_v30, 9 }
  0x7c   : > { %v1869_v28 = vor.u32 %v1868_v31, %v1865_v38  ;;  %v1878_v4 = vrot.slane %v1876_v15, 4  ;;  %v2130_v57 = vrot.slane %v4852_v59, 5  ;;  %v3574_v11 = vcombine.low %v4837_v48, %v4840_v49 }
  0x7d   : > { %v746_v34 = vsel %vm4873_vm2, %v741_v37, %v745_v9  ;;  %v1884_v63 = vrot.slane %v1882_v62, 5  ;;  %v2144_v9 = vrot.slane %v4941_v24, 5  ;;  %v5875_v48 = vrot.slane %v4897_v33, 5  ;;  %v5220_v33 = vld [vmem:[%s4834_s30 + $0x9c] sm:$0xe] }
  0x7e   : > { %v3565_v7 = vcombine.low %v736_v55, %v746_v34  ;;  %v1870_v30 = vrot.slane %v1869_v28, 4  ;;  %v1879_v10 = vor.u32 %v1878_v4, %v1874_v58  ;;  %v2131_v12 = vsel %vm5170_vm5, %v3742_v35, %v2130_v57  ;;  %v3737_v35 = vld [vmem:[%s4834_s30 + $0x84] sm:$0xe] }
  0x7f   : > { %v2132_v22 = vrot.slane %v2130_v57, 4  ;;  %v2139_v49 = vrot.slane %v5875_v48, 4  ;;  %v2140_v38 = vrot.slane %v4909_v43, 5  ;;  %v5876_v31 = vrot.slane %v4855_v60, 5 }
  0x80   : > { %4109 = vmatmul.mubr.bf16.gmra.mrb[12].mxu1 %v3565_v7  ;;  %v1875_v59 = vsel %vm4873_vm2, %v1870_v30, %v1874_v58  ;;  %v1880_v23 = vrot.slane %v1879_v10, 4  ;;  %v3743_v58 = vrot.slane %v3735_v21, 9  ;;  %v3744_v62 = vrot.slane %v3736_v19, 9  ;;  %v3738_v21 = vld [vmem:[%s4834_s30 + $0x90] sm:$0xe]  ;;  %v4575_v7 = vld [vmem:[%s5864_s1 + $0x88] sm:$0xff]  }
  0x81   : > { %4128 = vmatprep.mubr.bf16.mxu1 %v3574_v11  ;;  %v2134_v15 = vsel %vm5170_vm5, %v2132_v22, %v5876_v31  ;;  %v2146_v28 = vrot.slane %v2144_v9, 4  ;;  %v2147_v4 = vrot.slane %v4946_v29, 5  ;;  %v1166_v43 = vrot.slane %v4843_v50, 5 }
  0x82   : > { %v1885_v55 = vsel %vm4873_vm2, %v1880_v23, %v1884_v63  ;;  %v3766_v37 = vcombine.low %v2131_v12, %v2134_v15  ;;  %v1173_v60 = vrot.slane %v4889_v26, 5  ;;  %v3575_v57 = vcombine.low %v4866_v6, %v4879_v13  ;;  %v4581_v15 = vld [vmem:[%s5864_s1 + $0x98] sm:$0xff]  }
  0x83   : > { %v3725_v24 = vcombine.low %v1875_v59, %v1885_v55  ;;  %v2141_v34 = vsel %vm5170_vm5, %v2139_v49, %v2140_v38  ;;  %v3576_v11 = vcombine.low %v4918_v61, %v4926_v5  ;;  %v5877_v19 = vmov %v5875_v48  ;;  %v5230_v59 = vld [vmem:[%s4834_s30 + $0xa8] sm:$0xe] }
  0x84   : > { %v2138_v29 = vsel %vm5170_vm5, %v3743_v58, %v5877_v19  ;;  %v3745_v6 = vrot.slane %v3737_v35, 9  ;;  %v2151_v13 = vrot.slane %v4972_v3, 5  ;;  %v2158_v30 = vrot.slane %v5029_v20, 5  ;;  %v4576_v20 = vld [vmem:[%s5864_s1 + $0x188] sm:$0xff]  }
  0x85   : > { %4237 = vmatmul.mubr.bf16.gmra.mrb[12].mxu0 %v3725_v24  ;;  %v2145_v61 = vsel %vm5170_vm5, %v3744_v62, %v2144_v9  ;;  %v2148_v5 = vsel %vm5170_vm5, %v2146_v28, %v2147_v4  ;;  %v2154_v10 = vrot.slane %v4991_v27, 5  ;;  %v3746_v63 = vrot.slane %v3738_v21, 9  ;;  %v5233_v27 = vld [vmem:[%s4834_s30 + $0xb4] sm:$0xe]  ;;  %v5260_v28 = vld [vmem:[%s4834_s30 + $0x4] sm:$0xf] }
  0x86   : > { %4256 = vmatprep.mubr.bf16.mxu0 %v3766_v37  ;;  %v2161_v12 = vrot.slane %v5038_v36, 5  ;;  %v2165_v22 = vrot.slane %v5066_v17, 5  ;;  %v3767_v3 = vcombine.low %v2138_v29, %v2141_v34  ;;  %v3768_v23 = vcombine.low %v2145_v61, %v2148_v5  ;;  %v4585_v21 = vld [vmem:[%s5864_s1 + $0xa0] sm:$0xff]   ;;  %v5315_v17 = vld [vmem:[%s4834_s30 + $0x18] sm:$0xe] }
  0x87   : > { %v2153_v9 = vrot.slane %v2151_v13, 4  ;;  %v2160_v48 = vrot.slane %v2158_v30, 4  ;;  %v3577_v36 = vcombine.low %v4955_v40, %v4962_v52  ;;  %v2152_v49 = vsel %vm5170_vm5, %v3745_v6, %v2151_v13  ;;  %v5283_v13 = vld [vmem:[%s4834_s30 + $0x10] sm:$0xf] }
  0x88   : > { %4129 = vmatmul.mubr.bf16.vlgmr.msra.gmra.mrb[0].mxu1 %v3575_v57  ;;  %v3578_v38 = vcombine.low %v4998_v41, %v5004_v45  ;;  %v3747_v31 = vrot.slane %v5220_v33, 9  ;;  %v2167_v40 = vrot.slane %v2165_v22, 4  ;;  %v2168_v55 = vrot.slane %v5079_v32, 5  ;;  %v4580_v41 = vld [vmem:[%s5864_s1 + $0x190] sm:$0xff]   ;;  %v1134_v57 = vld [vmem:[%s4834_s30] sm:$0xe] }
  0x89   : > { %4145 = vmatpush3.bf16.msra.mxu1 %v5084_v54  ;;  %4132 = vmatprep.mubr.bf16.mxu1 %v3576_v11  ;;  %v4579_v54 = vld [vmem:[%s5864_s1 + $0x90] sm:$0xff]   ;;  %v3748_v37 = vrot.slane %v5230_v59, 9  ;;  %v2172_v58 = vrot.slane %v5120_v2, 5  ;;  %v2175_v62 = vrot.slane %v5125_v16, 5  ;;  %v3749_v35 = vrot.slane %v5233_v27, 9 }
  0x8a   : > { %4146 = vmatprep.subr.bf16.mxu1 %v4575_v7  ;;  %v2179_v24 = vrot.slane %v5149_v39, 5  ;;  %v1163_v32 = vrot.slane %v5260_v28, 5  ;;  %v2155_v2 = vsel %vm5170_vm5, %v2153_v9, %v2154_v10  ;;  %v2159_v4 = vsel %vm5170_vm5, %v3746_v63, %v2158_v30  ;;  %v1137_v33 = vld [vmem:[%s4834_s30 + $0x24] sm:$0xe]  ;;  %v1139_v28 = vld [vmem:[%s4834_s30 + $0x3c] sm:$0xe] }
  0x8b   : > { %v2162_v16 = vsel %vm5170_vm5, %v2160_v48, %v2161_v12  ;;  %v3769_v34 = vcombine.low %v2152_v49, %v2155_v2  ;;  %v2174_v19 = vrot.slane %v2172_v58, 4  ;;  %v2182_v29 = vrot.slane %v5155_v25, 5  ;;  %v4587_v12 = vld [vmem:[%s5864_s1 + $0xa8] sm:$0xff]   ;;  %v4637_v2 = vld [vmem:[%s4834_s30 + $0x1c] sm:$0xf]  ;;  %v4592_v25 = vld [vmem:[%s5864_s1 + $0x1b0] sm:$0xff]  }
  0x8c   : > { %v3770_v11 = vcombine.low %v2159_v4, %v2162_v16  ;;  %v3590_v6 = vrot.slane %v1134_v57, 9  ;;  %v1170_v30 = vrot.slane %v5283_v13, 5  ;;  %v1184_v61 = vrot.slane %v4962_v52, 5  ;;  %v1141_v13 = vld [vmem:[%s4834_s30 + $0x54] sm:$0xe] }
  0x8d   : > { %4257 = vmatmul.mubr.bf16.vlgmr.msra.gmra.mrb[0].mxu0 %v3767_v3  ;;  %4147 = vmatpush3.bf16.msra.mxu1 %v4575_v7  ;;  %v5280_v7 = vrot.slane %v2179_v24, 4  ;;  %v1165_v5 = vrot.slane %v1163_v32, 4  ;;  %v1187_v10 = vrot.slane %v4965_v53, 5  ;;  %v3579_v63 = vcombine.low %v5047_v46, %v5050_v47 }
  0x8e   : > { %4273 = vmatpush3.bf16.msra.mxu0 %v5114_v51  ;;  %4260 = vmatprep.mubr.bf16.mxu0 %v3768_v23  ;;  %v4582_v51 = vld [vmem:[%s5864_s1 + $0x198] sm:$0xff]   ;;  %v3580_v3 = vcombine.low %v5092_v14, %v5098_v18  ;;  %v3593_v52 = vrot.slane %v1137_v33, 9  ;;  %v1186_v59 = vrot.slane %v1184_v61, 4  ;;  %v2166_v53 = vsel %vm5170_vm5, %v3747_v31, %v2165_v22  ;;  %v4586_v23 = vld [vmem:[%s5864_s1 + $0x1a0] sm:$0xff]  }
  0x8f   : > { %4274 = vmatprep.subr.bf16.mxu0 %v4576_v20  ;;  %4148 = vmatprep.subr.bf16.mxu1 %v4579_v54  ;;  %v2169_v46 = vsel %vm5170_vm5, %v2167_v40, %v2168_v55  ;;  %v2173_v14 = vsel %vm5170_vm5, %v3748_v37, %v2172_v58  ;;  %v2176_v9 = vsel %vm5170_vm5, %v2174_v19, %v2175_v62  ;;  %v1191_v49 = vrot.slane %v5004_v45, 5  ;;  %v1138_v40 = vld [vmem:[%s4834_s30 + $0x30] sm:$0xe]  ;;  %v4588_v37 = vld [vmem:[%s5864_s1 + $0x1a8] sm:$0xff]  }
  0x90   : > { %4133 = vmatmul.mubr.bf16.gmra.mrb[4].mxu1 %v3577_v36  ;;  %v5319_v22 = vsel %vm5170_vm5, %v3593_v52, %v1184_v61  ;;  %v5323_v48 = vsel %vm5170_vm5, %v1186_v59, %v1187_v10  ;;  %v3581_v31 = vcombine.low %v5128_v44, %v5131_v42  ;;  %v1194_v55 = vrot.slane %v5014_v1, 5  ;;  %v4591_v1 = vld [vmem:[%s5864_s1 + $0xb0] sm:$0xff]   ;;  %v5879_v10 = vld [vmem:[#allocation4_spill] sm:$0xff]  ;;  %v4594_v52 = vld [vmem:[%s5864_s1 + $0x1b8] sm:$0xff]  }
  0x91   : > { %4149 = vmatpush3.bf16.msra.mxu1 %v4579_v54  ;;  %4136 = vmatprep.mubr.bf16.mxu1 %v3578_v38  ;;  %v3617_v54 = vcombine.low %v5319_v22, %v5323_v48  ;;  %v3771_v38 = vcombine.low %v2166_v53, %v2169_v46  ;;  %v3772_v45 = vcombine.low %v2173_v14, %v2176_v9  ;;  %v3594_v44 = vrot.slane %v1138_v40, 9  ;;  %v4607_v22 = vld [vmem:[%s4834_s30 + $0xf0] sm:$0xff]   ;;  %v4608_v48 = vld [vmem:[%s5864_s1 + $0xe0] sm:$0xff]  }
  0x92   : > { %4275 = vmatpush3.bf16.msra.mxu0 %v4576_v20  ;;  %4150 = vmatprep.subr.bf16.mxu1 %v4581_v15  ;;  %v5299_v20 = vld [vmem:[%s4834_s30 + $0xc] sm:$0xe]  ;;  %v1164_v58 = vsel %vm5170_vm5, %v3590_v6, %v1163_v32  ;;  %v1167_v62 = vsel %vm5170_vm5, %v1165_v5, %v1166_v43  ;;  %v1177_v4 = vrot.slane %v4637_v2, 5  ;;  %v1198_v16 = vrot.slane %v5050_v47, 5  ;;  %v5878_v32 = vld [vmem:[#allocation3_spill] sm:$0xff]  ;;  %v4593_v43 = vld [vmem:[%s5864_s1 + $0xb8] sm:$0xff]  }
  0x93   : > { %4276 = vmatprep.subr.bf16.mxu0 %v4580_v41  ;;  %v3591_v36 = vrot.slane %v5299_v20, 9  ;;  %v1201_v57 = vrot.slane %v5878_v32, 5  ;;  %v2180_v47 = vsel %vm5170_vm5, %v3749_v35, %v2179_v24  ;;  %v2183_v39 = vsel %vm5170_vm5, %v5280_v7, %v2182_v29  ;;  %v1140_v7 = vld [vmem:[%s4834_s30 + $0x48] sm:$0xe] }
  0x94   : > { %v1200_v61 = vrot.slane %v1198_v16, 4  ;;  %v3614_v27 = vcombine.low %v1164_v58, %v1167_v62  ;;  %v1179_v24 = vrot.slane %v1177_v4, 4  ;;  %v1205_v33 = vrot.slane %v5098_v18, 5  ;;  %v5450_v62 = vld [vmem:[%s4834_s30 + $0xc8] sm:$0x1] }
  0x95   : > { %4261 = vmatmul.mubr.bf16.gmra.mrb[4].mxu0 %v3769_v34  ;;  %4151 = vmatpush3.bf16.msra.mxu1 %v4581_v15  ;;  %v1172_v15 = vrot.slane %v1170_v30, 4  ;;  %v3592_v34 = vrot.slane %v5315_v17, 9  ;;  %v1171_v18 = vsel %vm5170_vm5, %v3591_v36, %v1170_v30  ;;  %v1212_v46 = vrot.slane %v5131_v42, 5  ;;  %v4596_v42 = vld [vmem:[%s5864_s1 + $0xc0] sm:$0xff]  }
  0x96   : > { %4277 = vmatpush3.bf16.msra.mxu0 %v4580_v41  ;;  %4264 = vmatprep.mubr.bf16.mxu0 %v3770_v11  ;;  %v1193_v41 = vrot.slane %v1191_v49, 4  ;;  %v3595_v11 = vrot.slane %v1139_v28, 9  ;;  %v5385_v5 = vsel %vm5170_vm5, %v1200_v61, %v1201_v57  ;;  %v1207_v20 = vrot.slane %v1205_v33, 4  ;;  %v4600_v28 = vld [vmem:[%s5864_s1 + $0x1c8] sm:$0xff]   ;;  %v5471_v61 = vld [vmem:[%s4834_s30 + $0xd0] sm:$0xf] }
  0x97   : > { %4278 = vmatprep.subr.bf16.mxu0 %v4582_v51  ;;  %4152 = vmatprep.subr.bf16.mxu1 %v4585_v21  ;;  %v1174_v59 = vsel %vm5170_vm5, %v1172_v15, %v1173_v60  ;;  %v1178_v53 = vsel %vm5170_vm5, %v3592_v34, %v1177_v4  ;;  %v1215_v30 = vrot.slane %v5140_v56, 5  ;;  %v3597_v9 = vrot.slane %v1141_v13, 9  ;;  %v4599_v15 = vld [vmem:[%s5864_s1 + $0xc8] sm:$0xff]  }
  0x98   : > { %4137 = vmatmul.mubr.bf16.gmra.mrb[8].mxu1 %v3579_v63  ;;  %v5360_v50 = vsel %vm5170_vm5, %v1193_v41, %v1194_v55  ;;  %v5381_v35 = vsel %vm5170_vm5, %v3595_v11, %v1198_v16  ;;  %v1208_v63 = vrot.slane %v5879_v10, 5  ;;  %v1214_v17 = vrot.slane %v1212_v46, 4  ;;  %v4598_v55 = vld [vmem:[%s5864_s1 + $0x1c0] sm:$0xff]   ;;  %v4597_v41 = vld [vmem:[%s4834_s30 + $0xcc] sm:$0xff]   ;;  %v4606_v10 = vld [vmem:[%s5864_s1 + $0x1d8] sm:$0xff]  }
  0x99   : > { %4153 = vmatpush3.bf16.msra.mxu1 %v4585_v21  ;;  %4140 = vmatprep.mubr.bf16.mxu1 %v3580_v3  ;;  %v4638_v21 = vld [vmem:[%s4834_s30 + $0x20] sm:$0x1]  ;;  %v3619_v29 = vcombine.low %v5381_v35, %v5385_v5  ;;  %v3596_v3 = vrot.slane %v1140_v7, 9  ;;  %v3615_v36 = vcombine.low %v1171_v18, %v1174_v59  ;;  %v4602_v16 = vld [vmem:[%s5864_s1 + $0xd0] sm:$0xff]   ;;  %v3833_v34 = vld [vmem:[%s4834_s30 + $0xcc] sm:$0xf] }
  0x9a   : > { %4279 = vmatpush3.bf16.msra.mxu0 %v4582_v51  ;;  %4154 = vmatprep.subr.bf16.mxu1 %v4587_v12  ;;  %v5356_v51 = vsel %vm5170_vm5, %v3594_v44, %v1191_v49  ;;  %v1180_v19 = vrot.slane %v4638_v21, 5  ;;  %v5420_v60 = vsel %vm5170_vm5, %v1207_v20, %v1208_v63  ;;  %v5429_v49 = vsel %vm5170_vm5, %v3597_v9, %v1212_v46  ;;  %v4604_v11 = vld [vmem:[%s5864_s1 + $0x1d0] sm:$0xff]   ;;  %v4603_v7 = vld [vmem:[%s4834_s30 + $0xe4] sm:$0xff]   ;;  %v5490_v18 = vld [vmem:[%s4834_s30 + $0xdc] sm:$0xf] }
  0x9b   : > { %4280 = vmatprep.subr.bf16.mxu0 %v4586_v23  ;;  %v3618_v6 = vcombine.low %v5356_v51, %v5360_v50  ;;  %v5416_v26 = vsel %vm5170_vm5, %v3596_v3, %v1205_v33  ;;  %v2695_v63 = vshll.u32 %v5471_v61, 16  ;;  %v2719_v13 = vshll.u32 %v5490_v18, 16  ;;  %v5513_v9 = vld [vmem:[%s4834_s30 + $0xe0] sm:$0x1] }
  0x9c   : > { %v1181_v14 = vsel %vm5170_vm5, %v1179_v24, %v1180_v19  ;;  %v3620_v56 = vcombine.low %v5416_v26, %v5420_v60  ;;  %v2689_v24 = vshll.u32 %v3833_v34, 16  ;;  %v2723_v46 = vshrl.u32 %v5490_v18, 16  ;;  %v4612_v26 = vld [vmem:[%s5864_s1 + $0x1e8] sm:$0xff]   ;;  %v4614_v60 = vld [vmem:[%s5864_s1 + $0xf0] sm:$0xff]  }
  0x9d   : > { %4265 = vmatmul.mubr.bf16.gmra.mrb[8].mxu0 %v3771_v38  ;;  %4155 = vmatpush3.bf16.msra.mxu1 %v4587_v12  ;;  %v3773_v12 = vcombine.low %v2180_v47, %v2183_v39  ;;  %v3616_v38 = vcombine.low %v1178_v53, %v1181_v14  ;;  %v4605_v47 = vld [vmem:[%s5864_s1 + $0xd8] sm:$0xff]   ;;  %v5474_v39 = vld [vmem:[%s4834_s30 + $0xd4] sm:$0x1]  ;;  %v3111_v8 = vrot.slane %v5490_v18, 5 }
  0x9e   : > { %4281 = vmatpush3.bf16.msra.mxu0 %v4586_v23  ;;  %4268 = vmatprep.mubr.bf16.mxu0 %v3772_v45  ;;  %v4595_v23 = vld [vmem:[%s4834_s30 + $0xc0] sm:$0xff]   ;;  %v2705_v20 = vshll.u32 %v5474_v39, 16  ;;  %v3107_v18 = vrot.slane %v5474_v39, 5 }
  0x9f   : > { %4282 = vmatprep.subr.bf16.mxu0 %v4588_v37  ;;  %4156 = vmatprep.subr.bf16.mxu1 %v4591_v1  ;;  %v5445_v45 = vld [vmem:[%s4834_s30 + $0xc4] sm:$0xf] }
  0xa0   : > { %4141 = vmatmul.mubr.bf16.gmra.mrb[12].mxu1 %v3581_v31  ;;  %v5433_v31 = vsel %vm5170_vm5, %v1214_v17, %v1215_v30  ;;  %v2671_v2 = vshll.u32 %v5445_v45, 16  ;;  %v2675_v4 = vshrl.u32 %v5445_v45, 16  ;;  %v4610_v30 = vld [vmem:[%s5864_s1 + $0x1e0] sm:$0xff]  }
  0xa1   : > { %4157 = vmatpush3.bf16.msra.mxu1 %v4591_v1  ;;  %4160 = vmatprep.mubr.bf16.mxu1 %v3614_v27  ;;  %v3621_v40 = vcombine.low %v5429_v49, %v5433_v31  ;;  %v4601_v1 = vld [vmem:[%s4834_s30 + $0xd8] sm:$0xff]   ;;  %v2686_v27 = vshrl.u32 %v3833_v34, 16  ;;  %v5557_v34 = vrot.slane %v2705_v20, 5 }
  0xa2   : > { %4283 = vmatpush3.bf16.msra.mxu0 %v4588_v37  ;;  %4158 = vmatprep.subr.bf16.mxu1 %v4593_v43  ;;  %v3830_v37 = vld [vmem:[%s4834_s30 + $0xc0] sm:$0xf]  ;;  %v5468_v21 = vrot.slane %v2671_v2, 5  ;;  %v2677_v19 = vrot.slane %v2675_v4, 4 }
  0xa3   : > { %4284 = vmatprep.subr.bf16.mxu0 %v4592_v25  ;;  %v2662_v58 = vshrl.u32 %v3830_v37, 16  ;;  %v2665_v44 = vshll.u32 %v3830_v37, 16  ;;  %v2688_v50 = vrot.slane %v2686_v27, 4  ;;  %v4613_v37 = vld [vmem:[%s4834_s30 + $0x108] sm:$0xff]   ;;  %v4617_v27 = vld [vmem:[%s5864_s1 + $0xf8] sm:$0xff]  }
  0xa5   : > { %4269 = vmatmul.mubr.bf16.gmra.mrb[12].mxu0 %v3773_v12  ;;  %4159 = vmatpush3.bf16.msra.mxu1 %v4593_v43  ;;  %v2664_v32 = vrot.slane %v2662_v58, 4  ;;  %v2667_v57 = vrot.slane %v2665_v44, 5  ;;  %v2681_v43 = vshll.u32 %v5450_v62, 16  ;;  %v2699_v12 = vshrl.u32 %v5471_v61, 16 }
  0xa6   : > { %4285 = vmatpush3.bf16.msra.mxu0 %v4592_v25  ;;  %4288 = vmatprep.mubr.bf16.mxu0 %v4595_v23  ;;  %v3836_v25 = vld [vmem:[%s4834_s30 + $0xd8] sm:$0xf]  ;;  %v5510_v23 = vrot.slane %v2695_v63, 5  ;;  %v5528_v44 = vrot.slane %v2719_v13, 5  ;;  %v5575_v63 = vld [vmem:[%s4834_s30 + $0xec] sm:$0x1] }
  0xa7   : > { %4286 = vmatprep.subr.bf16.mxu0 %v4594_v52  ;;  %4176 = vmatprep.subr.bf16.mxu1 %v4596_v42  ;;  %v2668_v33 = vor.u32 %v2667_v57, %v2664_v32  ;;  %v2710_v3 = vshrl.u32 %v3836_v25, 16  ;;  %v5497_v51 = vrot.slane %v2681_v43, 5  ;;  %v2713_v53 = vshll.u32 %v3836_v25, 16 }
  0xa8   : > { %4161 = vmatmul.mubr.bf16.vlgmr.msra.gmra.mrb[0].mxu1 %v3615_v36  ;;  %v2701_v14 = vrot.slane %v2699_v12, 4  ;;  %v3839_v36 = vld [vmem:[%s4834_s30 + $0xe4] sm:$0xf] }
  0xa9   : > { %4177 = vmatpush3.bf16.msra.mxu1 %v4596_v42  ;;  %4164 = vmatprep.mubr.bf16.mxu1 %v3616_v38  ;;  %v5503_v59 = vrot.slane %v2668_v33, 4  ;;  %v5517_v17 = vrot.slane %v2710_v3, 4  ;;  %v2715_v58 = vrot.slane %v2713_v53, 5  ;;  %v2734_v4 = vshrl.u32 %v3839_v36, 16  ;;  %v4615_v3 = vld [vmem:[%s4834_s30 + $0x114] sm:$0xff]  }
  0xaa   : > { %4287 = vmatpush3.bf16.msra.mxu0 %v4594_v52  ;;  %4178 = vmatprep.subr.bf16.mxu1 %v4599_v15  ;;  %v4611_v52 = vld [vmem:[%s5864_s1 + $0xe8] sm:$0xff]   ;;  %v2702_v2 = vor.u32 %v2701_v14, %v5510_v23  ;;  %v2737_v35 = vshll.u32 %v3839_v36, 16 }
  0xab   : > { %4304 = vmatprep.subr.bf16.mxu0 %v4598_v55  ;;  %v2716_v25 = vor.u32 %v2715_v58, %v5517_v17  ;;  %v2736_v12 = vrot.slane %v2734_v4, 4  ;;  %v4620_v17 = vld [vmem:[%s4834_s30 + $0x6c] sm:$0xff]  }
  0xac   : > { %v5568_v33 = vrot.slane %v2702_v2, 4  ;;  %v3848_v2 = vld [vmem:[%s4834_s30 + $0x108] sm:$0xf]  ;;  %v5613_v4 = vld [vmem:[%s4834_s30 + $0x10c] sm:$0xf] }
  0xad   : > { %4289 = vmatmul.mubr.bf16.vlgmr.msra.gmra.mrb[0].mxu0 %v4597_v41  ;;  %4179 = vmatpush3.bf16.msra.mxu1 %v4599_v15  ;;  %v5521_v15 = vld [vmem:[%s4834_s30 + $0xe8] sm:$0xf]  ;;  %v2725_v41 = vrot.slane %v2723_v46, 4  ;;  %v2717_v13 = vrot.slane %v2716_v25, 4  ;;  %v2753_v46 = vshll.u32 %v5575_v63, 16 }
  0xae   : > { %4305 = vmatpush3.bf16.msra.mxu0 %v4598_v55  ;;  %4292 = vmatprep.mubr.bf16.mxu0 %v4601_v1  ;;  %v4609_v55 = vld [vmem:[%s4834_s30 + $0xfc] sm:$0xff]   ;;  %v2729_v1 = vshll.u32 %v5513_v9, 16  ;;  %v2743_v5 = vshll.u32 %v5521_v15, 16  ;;  %v5641_v25 = vld [vmem:[%s4834_s30 + $0x104] sm:$0x1] }
  0xaf   : > { %4306 = vmatprep.subr.bf16.mxu0 %v4600_v28  ;;  %4180 = vmatprep.subr.bf16.mxu1 %v4602_v16 }
  0xb0   : > { %4165 = vmatmul.mubr.bf16.gmra.mrb[4].mxu1 %v3617_v54  ;;  %v2678_v54 = vor.u32 %v2677_v19, %v5468_v21 }
  0xb1   : > { %4181 = vmatpush3.bf16.msra.mxu1 %v4602_v16  ;;  %4168 = vmatprep.mubr.bf16.mxu1 %v3618_v6  ;;  %v2691_v6 = vrot.slane %v2689_v24, 5  ;;  %v5539_v16 = vld [vmem:[%s4834_s30 + $0xf4] sm:$0xf]  ;;  %v4619_v24 = vld [vmem:[%s4834_s30 + $0x60] sm:$0xff]  }
  0xb2   : > { %4307 = vmatpush3.bf16.msra.mxu0 %v4600_v28  ;;  %4182 = vmatprep.subr.bf16.mxu1 %v4605_v47  ;;  %v5515_v42 = vrot.slane %v2678_v54, 4  ;;  %v3842_v28 = vld [vmem:[%s4834_s30 + $0xf0] sm:$0xf]  ;;  %v2767_v43 = vshll.u32 %v5539_v16, 16  ;;  %v2771_v19 = vshrl.u32 %v5539_v16, 16 }
  0xb3   : > { %4308 = vmatprep.subr.bf16.mxu0 %v4604_v11  ;;  %v2692_v38 = vor.u32 %v2691_v6, %v2688_v50 }
  0xb4   : > { %v2684_v32 = vsel %vm4873_vm2, %v5515_v42, %v5497_v51  ;;  %v5581_v51 = vld [vmem:[%s4834_s30 + $0xf8] sm:$0x1]  ;;  %v5586_v20 = vrot.slane %v2767_v43, 5  ;;  %v5596_v42 = vld [vmem:[%s4834_s30 + $0x100] sm:$0xf] }
  0xb5   : > { %4293 = vmatmul.mubr.bf16.gmra.mrb[4].mxu0 %v4603_v7  ;;  %4183 = vmatpush3.bf16.msra.mxu1 %v4605_v47  ;;  %v5555_v57 = vrot.slane %v2692_v38, 4  ;;  %v2761_v47 = vshll.u32 %v3842_v28, 16  ;;  %v2726_v7 = vor.u32 %v2725_v41, %v5528_v44  ;;  %v2777_v14 = vshll.u32 %v5581_v51, 16 }
  0xb6   : > { %4309 = vmatpush3.bf16.msra.mxu0 %v4604_v11  ;;  %4296 = vmatprep.mubr.bf16.mxu0 %v4607_v22  ;;  %v2758_v11 = vshrl.u32 %v3842_v28, 16  ;;  %v2739_v22 = vrot.slane %v2737_v35, 5  ;;  %v2708_v38 = vsel %vm4873_vm2, %v5568_v33, %v5557_v34  ;;  %v2722_v35 = vsel %vm4873_vm2, %v2717_v13, %v5528_v44  ;;  %v5638_v33 = vld [vmem:[%s5864_s1 + $0x210] sm:$0xff]  }
  0xb7   : > { %4310 = vmatprep.subr.bf16.mxu0 %v4606_v10  ;;  %4184 = vmatprep.subr.bf16.mxu1 %v4608_v48  ;;  %v2763_v6 = vrot.slane %v2761_v47, 5  ;;  %v2727_v49 = vrot.slane %v2726_v7, 4  ;;  %v2698_v36 = vsel %vm4873_vm2, %v5555_v57, %v5510_v23  ;;  %v4623_v23 = vld [vmem:[%s4834_s30 + $0x78] sm:$0xff]   ;;  %v2795_v28 = vshrl.u32 %v5596_v42, 16 }
  0xb8   : > { %4169 = vmatmul.mubr.bf16.gmra.mrb[8].mxu1 %v3619_v29  ;;  %v2747_v29 = vshrl.u32 %v5521_v15, 16  ;;  %v2760_v50 = vrot.slane %v2758_v11, 4  ;;  %v2740_v31 = vor.u32 %v2739_v22, %v2736_v12  ;;  %v5631_v44 = vrot.slane %v2777_v14, 5  ;;  %v3851_v22 = vld [vmem:[%s4834_s30 + $0x114] sm:$0xf] }
  0xb9   : > { %4185 = vmatpush3.bf16.msra.mxu1 %v4608_v48  ;;  %4172 = vmatprep.mubr.bf16.mxu1 %v3620_v56  ;;  %v2674_v56 = vsel %vm4873_vm2, %v5503_v59, %v5468_v21  ;;  %v4616_v21 = vld [vmem:[%s5864_s1 + $0x1f0] sm:$0xff]   ;;  %v5577_v48 = vrot.slane %v2743_v5, 5  ;;  %v4618_v59 = vld [vmem:[%s5864_s1 + $0x1f8] sm:$0xff]   ;;  %v5619_v5 = vrot.slane %v2753_v46, 5  ;;  %v2806_v57 = vshrl.u32 %v3848_v2, 16 }
  0xba   : > { %4311 = vmatpush3.bf16.msra.mxu0 %v4606_v10  ;;  %4186 = vmatprep.subr.bf16.mxu1 %v4611_v52  ;;  %v5572_v10 = vrot.slane %v2729_v1, 5  ;;  %v2749_v54 = vrot.slane %v2747_v29, 4  ;;  %v3870_v53 = vcombine.low %v2674_v56, %v2684_v32  ;;  %v2791_v29 = vshll.u32 %v5596_v42, 16 }
  0xbb   : > { %4312 = vmatprep.subr.bf16.mxu0 %v4610_v30  ;;  %v2741_v56 = vrot.slane %v2740_v31, 4  ;;  %v2809_v34 = vshll.u32 %v3848_v2, 16  ;;  %v2815_v11 = vshll.u32 %v5613_v4, 16  ;;  %v2819_v47 = vshrl.u32 %v5613_v4, 16 }
  0xbc   : > { %v5643_v7 = vrot.slane %v2791_v29, 5  ;;  %v2830_v31 = vshrl.u32 %v3851_v22, 16 }
  0xbd   : > { %4297 = vmatmul.mubr.bf16.gmra.mrb[8].mxu0 %v4609_v55  ;;  %4187 = vmatpush3.bf16.msra.mxu1 %v4611_v52  ;;  %v2773_v52 = vrot.slane %v2771_v19, 4  ;;  %v4621_v55 = vld [vmem:[%s5864_s1 + $0x200] sm:$0xff]   ;;  %v2746_v13 = vsel %vm4873_vm2, %v2741_v56, %v5577_v48 }
  0xbe   : > { %4313 = vmatpush3.bf16.msra.mxu0 %v4610_v30  ;;  %4300 = vmatprep.mubr.bf16.mxu0 %v4613_v37  ;;  %v3845_v30 = vld [vmem:[%s4834_s30 + $0xfc] sm:$0xf]  ;;  %v2764_v37 = vor.u32 %v2763_v6, %v2760_v50  ;;  %v2811_v50 = vrot.slane %v2809_v34, 5  ;;  %v5650_v6 = vrot.slane %v2815_v11, 5 }
  0xbf   : > { %4314 = vmatprep.subr.bf16.mxu0 %v4612_v26  ;;  %4188 = vmatprep.subr.bf16.mxu1 %v4614_v60  ;;  %v2774_v58 = vor.u32 %v2773_v52, %v5586_v20  ;;  %v2782_v41 = vshrl.u32 %v3845_v30, 16  ;;  %v2785_v1 = vshll.u32 %v3845_v30, 16  ;;  %v2821_v52 = vrot.slane %v2819_v47, 4  ;;  %v5660_v30 = vld [vmem:[%s4834_s30 + $0x110] sm:$0x1] }
  0xc0   : > { %4173 = vmatmul.mubr.bf16.gmra.mrb[12].mxu1 %v3621_v40  ;;  %v2750_v40 = vor.u32 %v2749_v54, %v5577_v48  ;;  %v2765_v43 = vrot.slane %v2764_v37, 4  ;;  %v5648_v54 = vld [vmem:[%s4834_s30 + $0x118] sm:$0xf]  ;;  %v2801_v37 = vshll.u32 %v5641_v25, 16  ;;  %v3890_v47 = vld [vmem:[%s4834_s30 + $0xf0] sm:$0xe] }
  0xc1   : > { %4189 = vmatpush3.bf16.msra.mxu1 %v4614_v60  ;;  %4192 = vmatprep.mubr.bf16.mxu1 %v4619_v24  ;;  %v2732_v60 = vsel %vm4873_vm2, %v2727_v49, %v5572_v10  ;;  %v2775_v19 = vrot.slane %v2774_v58, 4  ;;  %v3871_v24 = vcombine.low %v2698_v36, %v2708_v38  ;;  %v2797_v10 = vrot.slane %v2795_v28, 4  ;;  %v4627_v49 = vld [vmem:[%s4834_s30 + $0x90] sm:$0xff]   ;;  %v5669_v48 = vld [vmem:[%s5864_s1 + $0x218] sm:$0xff]  }
  0xc2   : > { %4315 = vmatpush3.bf16.msra.mxu0 %v4612_v26  ;;  %4190 = vmatprep.subr.bf16.mxu1 %v4617_v27  ;;  %v5626_v26 = vld [vmem:[%s5864_s1 + $0x208] sm:$0xff]   ;;  %v2751_v32 = vrot.slane %v2750_v40, 4  ;;  %v3872_v12 = vcombine.low %v2722_v35, %v2732_v60  ;;  %v2833_v40 = vshll.u32 %v3851_v22, 16  ;;  %v2839_v14 = vshll.u32 %v5648_v54, 16 }
  0xc3   : > { %4316 = vmatprep.subr.bf16.mxu0 %v4616_v21  ;;  %v2770_v36 = vsel %vm4873_vm2, %v2765_v43, %v5586_v20  ;;  %v2798_v38 = vor.u32 %v2797_v10, %v5643_v7  ;;  %v2803_v56 = vrot.slane %v2801_v37, 5  ;;  %v4628_v43 = vld [vmem:[%s4834_s30 + $0x9c] sm:$0xff]   ;;  %v4630_v22 = vld [vmem:[%s5864_s1 + $0x228] sm:$0xff]  }
  0xc4   : > { %v2835_v35 = vrot.slane %v2833_v40, 5 }
  0xc5   : > { %4301 = vmatmul.mubr.bf16.gmra.mrb[12].mxu0 %v4615_v3  ;;  %4191 = vmatpush3.bf16.msra.mxu1 %v4617_v27  ;;  %v2787_v27 = vrot.slane %v2785_v1, 5  ;;  %v2808_v3 = vrot.slane %v2806_v57, 4  ;;  %v2825_v1 = vshll.u32 %v5660_v30, 16  ;;  %v2799_v60 = vrot.slane %v2798_v38, 4  ;;  %v4629_v57 = vld [vmem:[%s5864_s1 + $0x220] sm:$0xff]  }
  0xc6   : > { %4317 = vmatpush3.bf16.msra.mxu0 %v4616_v21  ;;  %4320 = vmatprep.mubr.bf16.mxu0 %v3870_v53  ;;  %v2784_v21 = vrot.slane %v2782_v41, 4  ;;  %v4624_v53 = vld [vmem:[%s4834_s30 + $0x84] sm:$0xff]   ;;  %v2822_v41 = vor.u32 %v2821_v52, %v5650_v6 }
  0xc7   : > { %4318 = vmatprep.subr.bf16.mxu0 %v4618_v59  ;;  %4368 = vmatprep.subr.bf16.mxu1 %v4621_v55  ;;  %v2812_v58 = vor.u32 %v2811_v50, %v2808_v3  ;;  %v3898_v3 = vrot.slane %v3890_v47, 9  ;;  %v3892_v38 = vld [vmem:[%s4834_s30 + $0x108] sm:$0xe] }
  0xc8   : > { %4193 = vmatmul.mubr.bf16.vlgmr.msra.gmra.mrb[0].mxu1 %v4620_v17  ;;  %v2788_v46 = vor.u32 %v2787_v27, %v2784_v21  ;;  %v2843_v17 = vshrl.u32 %v5648_v54, 16  ;;  %v2823_v11 = vrot.slane %v2822_v41, 4  ;;  %v4631_v21 = vld [vmem:[%s4834_s30 + $0xa8] sm:$0xff]  }
  0xc9   : > { %4376 = vmatpush3.bf16.msra.mxu1 %v4621_v55  ;;  %4196 = vmatprep.mubr.bf16.mxu1 %v4623_v23  ;;  %v2832_v23 = vrot.slane %v2830_v31, 4  ;;  %v2813_v34 = vrot.slane %v2812_v58, 4 }
  0xca   : > { %4319 = vmatpush3.bf16.msra.mxu0 %v4618_v59  ;;  %4369 = vmatprep.subr.bf16.mxu1 %v5626_v26  ;;  %v2756_v59 = vsel %vm4873_vm2, %v2751_v32, %v5619_v5  ;;  %v2789_v2 = vrot.slane %v2788_v46, 4  ;;  %v5684_v5 = vrot.slane %v2839_v14, 5  ;;  %v2845_v29 = vrot.slane %v2843_v17, 4  ;;  %v5689_v32 = vld [vmem:[%s4834_s30 + $0x11c] sm:$0x1] }
  0xcb   : > { %4336 = vmatprep.subr.bf16.mxu0 %v4621_v55  ;;  %v3873_v20 = vcombine.low %v2746_v13, %v2756_v59  ;;  %v2836_v27 = vor.u32 %v2835_v35, %v2832_v23  ;;  %v2849_v10 = vshll.u32 %v5689_v32, 16  ;;  %v2818_v52 = vsel %vm4873_vm2, %v2813_v34, %v5650_v6  ;;  %v4634_v23 = vld [vmem:[%s5864_s1 + $0x238] sm:$0xff]  }
  0xcc   : > { %v3100_v46 = vrot.slane %v5450_v62, 5  ;;  %v3891_v62 = vld [vmem:[%s4834_s30 + $0xfc] sm:$0xe]  ;;  %v3139_v17 = vrot.slane %v5613_v4, 5  ;;  %v3104_v35 = vrot.slane %v5471_v61, 5  ;;  %v3149_v39 = vrot.slane %v5689_v32, 5 }
  0xcd   : > { %4321 = vmatmul.mubr.bf16.vlgmr.msra.gmra.mrb[0].mxu0 %v3871_v24  ;;  %4377 = vmatpush3.bf16.msra.mxu1 %v5626_v26  ;;  %v2846_v24 = vor.u32 %v2845_v29, %v5684_v5  ;;  %v2851_v40 = vrot.slane %v2849_v10, 5  ;;  %v3900_v29 = vrot.slane %v3892_v38, 9 }
  0xce   : > { %4337 = vmatpush3.bf16.msra.mxu0 %v4621_v55  ;;  %4324 = vmatprep.mubr.bf16.mxu0 %v3872_v12  ;;  %v2780_v55 = vsel %vm4873_vm2, %v2775_v19, %v5631_v44  ;;  %v3125_v44 = vrot.slane %v5539_v16, 5  ;;  %v3097_v19 = vrot.slane %v5445_v45, 5  ;;  %v2794_v16 = vsel %vm4873_vm2, %v2789_v2, %v5643_v7  ;;  %v3886_v12 = vld [vmem:[%s4834_s30 + $0xc0] sm:$0xe]  ;;  %v3887_v2 = vld [vmem:[%s4834_s30 + $0xcc] sm:$0xe] }
  0xcf   : > { %4338 = vmatprep.subr.bf16.mxu0 %v5626_v26  ;;  %4370 = vmatprep.subr.bf16.mxu1 %v5638_v33  ;;  %v3874_v28 = vcombine.low %v2770_v36, %v2780_v55  ;;  %v2804_v45 = vsel %vm4873_vm2, %v2799_v60, %v2803_v56  ;;  %v3128_v7 = vrot.slane %v5581_v51, 5  ;;  %v3894_v13 = vrot.slane %v3886_v12, 9  ;;  %v4633_v36 = vld [vmem:[%s5864_s1 + $0x230] sm:$0xff]  }
  0xd0   : > { %4197 = vmatmul.mubr.bf16.gmra.mrb[4].mxu1 %v4624_v53  ;;  %v3127_v50 = vrot.slane %v3125_v44, 4  ;;  %v3132_v53 = vrot.slane %v5596_v42, 5  ;;  %v3099_v59 = vrot.slane %v3097_v19, 4  ;;  %v3875_v51 = vcombine.low %v2794_v16, %v2804_v45  ;;  %v4632_v55 = vld [vmem:[%s4834_s30 + $0xb4] sm:$0xff]  }
  0xd1   : > { %4378 = vmatpush3.bf16.msra.mxu1 %v5638_v33  ;;  %4200 = vmatprep.mubr.bf16.mxu1 %v4627_v49  ;;  %v2837_v49 = vrot.slane %v2836_v27, 4  ;;  %v2847_v31 = vrot.slane %v2846_v24, 4  ;;  %v3126_v14 = vsel %vm5170_vm5, %v3898_v3, %v3125_v44  ;;  %v3098_v58 = vsel %vm5170_vm5, %v3894_v13, %v3097_v19  ;;  %v3888_v44 = vld [vmem:[%s4834_s30 + $0xd8] sm:$0xe] }
  0xd2   : > { %4339 = vmatpush3.bf16.msra.mxu0 %v5626_v26  ;;  %4371 = vmatprep.subr.bf16.mxu1 %v5669_v48  ;;  %v2827_v26 = vrot.slane %v2825_v1, 5  ;;  %v3129_v42 = vsel %vm5170_vm5, %v3127_v50, %v3128_v7  ;;  %v3134_v37 = vrot.slane %v3132_v53, 4  ;;  %v3101_v41 = vsel %vm5170_vm5, %v3099_v59, %v3100_v46  ;;  %v3889_v50 = vld [vmem:[%s4834_s30 + $0xe4] sm:$0xe] }
  0xd3   : > { %4340 = vmatprep.subr.bf16.mxu0 %v5638_v33  ;;  %v2842_v4 = vsel %vm4873_vm2, %v2837_v49, %v5684_v5  ;;  %v2852_v1 = vsel %vm4873_vm2, %v2847_v31, %v2851_v40  ;;  %v3142_v60 = vrot.slane %v5660_v30, 5  ;;  %v3895_v5 = vrot.slane %v3887_v2, 9 }
  0xd4   : > { %v3918_v34 = vcombine.low %v3098_v58, %v3101_v41  ;;  %v3146_v30 = vrot.slane %v5648_v54, 5  ;;  %v3896_v19 = vrot.slane %v3888_v44, 9  ;;  %v3113_v16 = vrot.slane %v3111_v8, 4 }
  0xd5   : > { %4325 = vmatmul.mubr.bf16.gmra.mrb[4].mxu0 %v3873_v20  ;;  %4379 = vmatpush3.bf16.msra.mxu1 %v5669_v48  ;;  %v3922_v20 = vcombine.low %v3126_v14, %v3129_v42  ;;  %v3105_v12 = vsel %vm5170_vm5, %v3895_v5, %v3104_v35  ;;  %v3121_v13 = vrot.slane %v5575_v63, 5 }
  0xd6   : > { %4341 = vmatpush3.bf16.msra.mxu0 %v5638_v33  ;;  %4328 = vmatprep.mubr.bf16.mxu0 %v3874_v28  ;;  %v2828_v33 = vsel %vm4873_vm2, %v2823_v11, %v2827_v26  ;;  %v3141_v28 = vrot.slane %v3139_v17, 4  ;;  %v3106_v11 = vrot.slane %v3104_v35, 4  ;;  %v3140_v26 = vsel %vm5170_vm5, %v3900_v29, %v3139_v17 }
  0xd7   : > { %4342 = vmatprep.subr.bf16.mxu0 %v5669_v48  ;;  %4372 = vmatprep.subr.bf16.mxu1 %v4629_v57  ;;  %v3876_v6 = vcombine.low %v2818_v52, %v2828_v33  ;;  %v3148_v10 = vrot.slane %v3146_v30, 4 }
  0xd8   : > { %4201 = vmatmul.mubr.bf16.gmra.mrb[8].mxu1 %v4628_v43  ;;  %v3143_v47 = vsel %vm5170_vm5, %v3141_v28, %v3142_v60  ;;  %v3893_v43 = vld [vmem:[%s4834_s30 + $0x114] sm:$0xe]  ;;  %v3108_v45 = vsel %vm5170_vm5, %v3106_v11, %v3107_v18  ;;  %s3539_s30 = sshll.u32 %s4699_s15, 4  ;;  %s5886_s15 = smov (!%p507_p9, %s4699_s15), 3 }
  0xd9   : > { %4380 = vmatpush3.bf16.msra.mxu1 %v4629_v57  ;;  %4204 = vmatprep.mubr.bf16.mxu1 %v4631_v21  ;;  %v3114_v21 = vrot.slane %v5513_v9, 5  ;;  %v3924_v54 = vcombine.low %v3140_v26, %v3143_v47  ;;  %v3901_v24 = vrot.slane %v3893_v43, 9  ;;  %v3112_v9 = vsel %vm5170_vm5, %v3896_v19, %v3111_v8  ;;  %p502_p8 = scmp.lt.s32.totalorder %s3539_s30, 63  ;;  %s3541_s23 = sshll.u32 %s5886_s15, 1 }
  0xda   : > { %4343 = vmatpush3.bf16.msra.mxu0 %v5669_v48  ;;  %4373 = vmatprep.subr.bf16.mxu1 %v4630_v22  ;;  %v3135_v48 = vrot.slane %v5641_v25, 5  ;;  %v3899_v25 = vrot.slane %v3891_v62, 9  ;;  %v3919_v32 = vcombine.low %v3105_v12, %v3108_v45  ;;  %v3150_v52 = vsel %vm5170_vm5, %v3148_v10, %v3149_v39  ;;  %s510_s25 = scalar_lea.vmem %s5866_s3, %s3541_s23 }
  0xdb   : > { %4344 = vmatprep.subr.bf16.mxu0 %v4629_v57  ;;  %v3115_v3 = vsel %vm5170_vm5, %v3113_v16, %v3114_v21  ;;  %v3147_v7 = vsel %vm5170_vm5, %v3901_v24, %v3146_v30  ;;  %s5884_s30 = smov (!%p502_p8, %s3539_s30), 63 }
  0xdc   : > { %v3136_v56 = vsel %vm5170_vm5, %v3134_v37, %v3135_v48  ;;  %v3133_v61 = vsel %vm5170_vm5, %v3899_v25, %v3132_v53  ;;  %v3920_v33 = vcombine.low %v3112_v9, %v3115_v3  ;;  %v3925_v59 = vcombine.low %v3147_v7, %v3150_v52  ;;  %s3540_s18 = sshll.u32 %s5884_s30, 3 }
  0xdd   : > { %4329 = vmatmul.mubr.bf16.gmra.mrb[8].mxu0 %v3875_v51  ;;  %4381 = vmatpush3.bf16.msra.mxu1 %v4630_v22  ;;  %v3923_v27 = vcombine.low %v3133_v61, %v3136_v56  ;;  %s5796_s22 = scalar_lea.vmem %s5865_s2, %s3540_s18 }
  0xde   : > { %4345 = vmatpush3.bf16.msra.mxu0 %v4629_v57  ;;  %4332 = vmatprep.mubr.bf16.mxu0 %v3876_v6  ;;  %v3877_v57 = vcombine.low %v2842_v4, %v2852_v1 }
  0xdf   : > { %4346 = vmatprep.subr.bf16.mxu0 %v4630_v22  ;;  %4374 = vmatprep.subr.bf16.mxu1 %v4633_v36 }
  0xe0   : > { %4205 = vmatmul.mubr.bf16.gmra.mrb[12].mxu1 %v4632_v55 }
  0xe1   : > { %4382 = vmatpush3.bf16.msra.mxu1 %v4633_v36  ;;  %4360 = vmatprep.mubr.bf16.mxu1 %v3922_v20 }
  0xe2   : > { %4347 = vmatpush3.bf16.msra.mxu0 %v4630_v22  ;;  %4375 = vmatprep.subr.bf16.mxu1 %v4634_v23  ;;  %v3118_v22 = vrot.slane %v5521_v15, 5  ;;  %v3897_v15 = vrot.slane %v3889_v50, 9 }
  0xe3   : > { %4348 = vmatprep.subr.bf16.mxu0 %v4633_v36 }
  0xe4   : > { %v3120_v53 = vrot.slane %v3118_v22, 4  ;;  %v3119_v46 = vsel %vm5170_vm5, %v3897_v15, %v3118_v22 }
  0xe5   : > { %4333 = vmatmul.mubr.bf16.gmra.mrb[12].mxu0 %v3877_v57  ;;  %4383 = vmatpush3.bf16.msra.mxu1 %v4634_v23 }
  0xe6   : > { %4349 = vmatpush3.bf16.msra.mxu0 %v4633_v36  ;;  %4352 = vmatprep.mubr.bf16.mxu0 %v3918_v34  ;;  %v3122_v51 = vsel %vm5170_vm5, %v3120_v53, %v3121_v13 }
  0xe7   : > { %4350 = vmatprep.subr.bf16.mxu0 %v4634_v23  ;;  %v3921_v49 = vcombine.low %v3119_v46, %v3122_v51 }
  0xe8   : > { %4361 = vmatmul.mubr.bf16.vlgmr.msra.gmra.mrb[16].mxu1 %v3923_v27 }
  0xe9   : > { %4364 = vmatprep.mubr.bf16.mxu1 %v3924_v54 }
  0xea   : > { %4351 = vmatpush3.bf16.msra.mxu0 %v4634_v23 }
  0xed   : > { %4353 = vmatmul.mubr.bf16.vlgmr.msra.gmra.mrb[0].mxu0 %v3919_v32 }
  0xee   : > { %4356 = vmatprep.mubr.bf16.mxu0 %v3920_v33 }
  0xf0   : > { %4365 = vmatmul.mubr.bf16.gmra.mrb[20].mxu1 %v3925_v59 }
  0xf5   : > { %4357 = vmatmul.mubr.bf16.gmra.mrb[4].mxu0 %v3921_v49 }
 0x19b   : > { %v4194_v31 = vpop.f32.mrb[0].mxu1 }
 0x19c   : > { %v1591_v40 = vpop.f32.mrb[1].mxu1 }
 0x19d   : > { %v4195_v6 = vpop.f32.mrb[2].mxu1 }
 0x19e   : > { %v1594_v14 = vpop.f32.mrb[3].mxu1 }
 0x1a3   : > { %v5784_v42 = vpop.f32.mrb[4].mxu1 }
 0x1a4   : > { %v5786_v63 = vpop.f32.mrb[5].mxu1 }
 0x1a5   : > { %v5788_v62 = vpop.f32.mrb[6].mxu1 }
 0x1a6   : > { %v5790_v17 = vpop.f32.mrb[7].mxu1 }
 0x1ab   : > { %v4202_v36 = vpop.f32.mrb[8].mxu1 }
 0x1ac   : > { %v1623_v38 = vpop.f32.mrb[9].mxu1 }
 0x1ad   : > { %v4203_v0 = vpop.f32.mrb[10].mxu1 }
 0x1ae   : > { %v1626_v37 = vpop.f32.mrb[11].mxu1 }
 0x1b0   : > { %v4330_v48 = vpop.f32.mrb[8].mxu0 }
 0x1b1   : > { %v4392_v55 = vadd.f32 %v4330_v48, %v4202_v36  ;;  %v3016_v58 = vpop.f32.mrb[9].mxu0 }
 0x1b2   : > { %v4394_v41 = vadd.f32 %v3016_v58, %v1623_v38  ;;  %v4331_v4 = vpop.f32.mrb[10].mxu0 }
 0x1b3   : > { %v4396_v1 = vadd.f32 %v4331_v4, %v4203_v0  ;;  %v3019_v20 = vpop.f32.mrb[11].mxu0  ;;  %v4206_v2 = vpop.f32.mrb[12].mxu1 }
 0x1b4   : > { %v4398_v25 = vadd.f32 %v3019_v20, %v1626_v37  ;;  %v1639_v23 = vpop.f32.mrb[13].mxu1 }
 0x1b5   : > { %v4207_v35 = vpop.f32.mrb[14].mxu1 }
 0x1b6   : > { %v1642_v29 = vpop.f32.mrb[15].mxu1 }
 0x1b8   : > { %v4334_v28 = vpop.f32.mrb[12].mxu0 }
 0x1b9   : > { %v4400_v60 = vadd.f32 %v4334_v28, %v4206_v2  ;;  %v3032_v8 = vpop.f32.mrb[13].mxu0 }
 0x1ba   : > { %v4402_v5 = vadd.f32 %v3032_v8, %v1639_v23  ;;  %v4335_v56 = vpop.f32.mrb[14].mxu0 }
 0x1bb   : > { %v4404_v44 = vadd.f32 %v4335_v56, %v4207_v35  ;;  %v3035_v57 = vpop.f32.mrb[15].mxu0  ;;  %v4362_v34 = vpop.f32.mrb[16].mxu1 }
 0x1bc   : > { %v4406_v61 = vadd.f32 %v3035_v57, %v1642_v29  ;;  %v5798_v30 = vadd.f32 %v4392_v55, %v4362_v34  ;;  %v3314_v11 = vpop.f32.mrb[17].mxu1 }
 0x1bd   : > { %v5800_v18 = vadd.f32 %v4394_v41, %v3314_v11  ;;  %v4363_v26 = vpop.f32.mrb[18].mxu1 }
 0x1be   : > { %3371 = vst [vmem:[%s5796_s22 + $0x50] sm:$0xff] %v5798_v30  ;;  %v5804_v47 = vadd.f32 %v4396_v1, %v4363_v26  ;;  %v3317_v43 = vpop.f32.mrb[19].mxu1 }
 0x1bf   : > { %3369 = vst [vmem:[%s5796_s22 + $0x40] sm:$0xff] %v5800_v18  ;;  %v5808_v19 = vadd.f32 %v4398_v25, %v3317_v43 }
 0x1c0   : > { %v4354_v16 = vpop.f32.mrb[0].mxu0  ;;  %3372 = vst [vmem:[%s5796_s22 + $0x58] sm:$0xff] %v5804_v47  ;;  %v3409_v57 = vmul.f32 %v5804_v47, %v5804_v47 }
 0x1c1   : > { %v4384_v21 = vadd.f32 %v4354_v16, %v4194_v31  ;;  %v3282_v27 = vpop.f32.mrb[1].mxu0  ;;  %3370 = vst [vmem:[%s5796_s22 + $0x48] sm:$0xff] %v5808_v19 }
 0x1c2   : > { %v4385_v54 = vadd.f32 %v3282_v27, %v1591_v40  ;;  %v4355_v24 = vpop.f32.mrb[2].mxu0 }
 0x1c3   : > { %3363 = vst [vmem:[%s5796_s22 + $0x10] sm:$0xff] %v4384_v21  ;;  %v4386_v10 = vadd.f32 %v4355_v24, %v4195_v6  ;;  %v3285_v39 = vpop.f32.mrb[3].mxu0  ;;  %v4366_v12 = vpop.f32.mrb[20].mxu1  ;;  %v3400_v13 = vmul.f32 %v4384_v21, %v4384_v21 }
 0x1c4   : > { %3361 = vst [vmem:[%s5796_s22] sm:$0xff] %v4385_v54  ;;  %v4387_v45 = vadd.f32 %v3285_v39, %v1594_v14  ;;  %v5816_v22 = vadd.f32 %v4400_v60, %v4366_v12  ;;  %v3330_v9 = vpop.f32.mrb[21].mxu1  ;;  %v3398_v32 = vmul.f32 %v4385_v54, %v4385_v54 }
 0x1c5   : > { %3364 = vst [vmem:[%s5796_s22 + $0x18] sm:$0xff] %v4386_v10  ;;  %v4403_v3 = vadd.f32 %v4402_v5, %v3330_v9  ;;  %v4367_v50 = vpop.f32.mrb[22].mxu1  ;;  %v3401_v40 = vmul.f32 %v4386_v10, %v4386_v10  ;;  %v3408_v5 = vmul.f32 %v5798_v30, %v5798_v30 }
 0x1c6   : > { %3362 = vst [vmem:[%s5796_s22 + $0x8] sm:$0xff] %v4387_v45  ;;  %v3377_v7 = vadd.f32 %v4387_v45, %v4385_v54  ;;  %v3399_v52 = vmul.f32 %v4387_v45, %v4387_v45  ;;  %3375 = vst [vmem:[%s5796_s22 + $0x70] sm:$0xff] %v5816_v22  ;;  %v4405_v33 = vadd.f32 %v4404_v44, %v4367_v50  ;;  %v3333_v15 = vpop.f32.mrb[23].mxu1 }
 0x1c7   : > { %3373 = vst [vmem:[%s5796_s22 + $0x60] sm:$0xff] %v4403_v3  ;;  %v4407_v53 = vadd.f32 %v4406_v61, %v3333_v15  ;;  %v3410_v11 = vmul.f32 %v4403_v3, %v4403_v3 }
 0x1c8   : > { %v3378_v59 = vadd.f32 %v4384_v21, %v3377_v7  ;;  %v3414_v46 = vadd.f32 %v3399_v52, %v3398_v32  ;;  %v4358_v51 = vpop.f32.mrb[4].mxu0  ;;  %3376 = vst [vmem:[%s5796_s22 + $0x78] sm:$0xff] %v4405_v33  ;;  %v3412_v21 = vmul.f32 %v5816_v22, %v5816_v22  ;;  %v3413_v54 = vmul.f32 %v4405_v33, %v4405_v33 }
 0x1c9   : > { %v4388_v49 = vadd.f32 %v4358_v51, %v5784_v42  ;;  %v3298_v31 = vpop.f32.mrb[5].mxu0  ;;  %3374 = vst [vmem:[%s5796_s22 + $0x68] sm:$0xff] %v4407_v53  ;;  %v3411_v16 = vmul.f32 %v4407_v53, %v4407_v53 }
 0x1ca   : > { %v3415_v6 = vadd.f32 %v3414_v46, %v3400_v13  ;;  %v4389_v14 = vadd.f32 %v3298_v31, %v5786_v63  ;;  %v3379_v36 = vadd.f32 %v4386_v10, %v3378_v59  ;;  %v4359_v38 = vpop.f32.mrb[6].mxu0 }
 0x1cb   : > { %3367 = vst [vmem:[%s5796_s22 + $0x30] sm:$0xff] %v4388_v49  ;;  %v4390_v0 = vadd.f32 %v4359_v38, %v5788_v62  ;;  %v3301_v37 = vpop.f32.mrb[7].mxu0  ;;  %v3404_v20 = vmul.f32 %v4388_v49, %v4388_v49  ;;  %v3406_v62 = vmul.f32 %v5800_v18, %v5800_v18 }
 0x1cc   : > { %3365 = vst [vmem:[%s5796_s22 + $0x20] sm:$0xff] %v4389_v14  ;;  %v3380_v48 = vadd.f32 %v4389_v14, %v3379_v36  ;;  %v3402_v55 = vmul.f32 %v4389_v14, %v4389_v14  ;;  %v3416_v58 = vadd.f32 %v3415_v6, %v3401_v40  ;;  %v4391_v42 = vadd.f32 %v3301_v37, %v5790_v17 }
 0x1cd   : > { %3368 = vst [vmem:[%s5796_s22 + $0x38] sm:$0xff] %v4390_v0  ;;  %v3405_v25 = vmul.f32 %v4390_v0, %v4390_v0  ;;  %v3407_v17 = vmul.f32 %v5808_v19, %v5808_v19 }
 0x1ce   : > { %v3417_v41 = vadd.f32 %v3416_v58, %v3402_v55  ;;  %3366 = vst [vmem:[%s5796_s22 + $0x28] sm:$0xff] %v4391_v42  ;;  %v3381_v4 = vadd.f32 %v4391_v42, %v3380_v48  ;;  %v3403_v1 = vmul.f32 %v4391_v42, %v4391_v42 }
 0x1d0   : > { %v3382_v2 = vadd.f32 %v4388_v49, %v3381_v4  ;;  %v3418_v63 = vadd.f32 %v3417_v41, %v3403_v1 }
 0x1d2   : > { %v3383_v23 = vadd.f32 %v4390_v0, %v3382_v2  ;;  %v3419_v35 = vadd.f32 %v3418_v63, %v3404_v20 }
 0x1d4   : > { %v3384_v29 = vadd.f32 %v5800_v18, %v3383_v23  ;;  %v3420_v28 = vadd.f32 %v3419_v35, %v3405_v25 }
 0x1d6   : > { %v3421_v60 = vadd.f32 %v3420_v28, %v3406_v62  ;;  %v3385_v8 = vadd.f32 %v5808_v19, %v3384_v29 }
 0x1d8   : > { %v3386_v56 = vadd.f32 %v5798_v30, %v3385_v8  ;;  %v3422_v44 = vadd.f32 %v3421_v60, %v3407_v17 }
 0x1da   : > { %v3387_v34 = vadd.f32 %v5804_v47, %v3386_v56  ;;  %v3423_v61 = vadd.f32 %v3422_v44, %v3408_v5 }
 0x1dc   : > { %v3388_v18 = vadd.f32 %v4403_v3, %v3387_v34  ;;  %v3424_v26 = vadd.f32 %v3423_v61, %v3409_v57 }
 0x1de   : > { %v3389_v43 = vadd.f32 %v4407_v53, %v3388_v18  ;;  %v3425_v19 = vadd.f32 %v3424_v26, %v3410_v11 }
 0x1e0   : > { %v3390_v30 = vadd.f32 %v5816_v22, %v3389_v43  ;;  %v3426_v27 = vadd.f32 %v3425_v19, %v3411_v16 }
 0x1e2   : > { %v3391_v24 = vadd.f32 %v4405_v33, %v3390_v30  ;;  %v3427_v10 = vadd.f32 %v3426_v27, %v3412_v21 }
 0x1e4   : > { %v3392_v39 = vrot.slane %v3391_v24, 4  ;;  %v3428_v47 = vadd.f32 %v3427_v10, %v3413_v54 }
 0x1e6   : > { %v3393_v12 = vadd.f32 %v3392_v39, %v3391_v24  ;;  %v3429_v45 = vrot.slane %v3428_v47, 4 }
 0x1e8   : > { %v3394_v9 = vrot.slane %v3393_v12, 2  ;;  %v3430_v3 = vadd.f32 %v3429_v45, %v3428_v47 }
 0x1ea   : > { %v3395_v50 = vadd.f32 %v3394_v9, %v3393_v12  ;;  %v3431_v32 = vrot.slane %v3430_v3, 2 }
 0x1ec   : > { %v3396_v7 = vrot.slane %v3395_v50, 1  ;;  %v3432_v52 = vadd.f32 %v3431_v32, %v3430_v3 }
 0x1ee   : > { %v3433_v15 = vrot.slane %v3432_v52, 1  ;;  %v3397_v22 = vadd.f32 %v3396_v7, %v3395_v50 }
 0x1f0   : > { %v3434_v33 = vadd.f32 %v3433_v15, %v3432_v52 }
 0x1f2   : > { %v3436_v53 = vsel %vm3435_vm6, %v3397_v22, %v3434_v33 }
 0x1f3   : > { %3437 = vst [vmem:[%s510_s25] sm:$0x3] %v3436_v53 }
 0x1f4 PF: > { %p11_p10 = scmp.ge.s32.totalorder %s4702_s16, 6   ;;  %s5880_s12 = smov %s4657_s13 }
 0x1f5   : > { %s5881_s13 = smov %s4711_s19  ;;  %s5882_s14 = smov %s4702_s16 }
 0x1f6   :  { %13 = sbr.rel (!%p11_p10) target bundleno = 2 (0x2), region = 126 }

// kernel: basic_block_forward.7
= control target key start
LH: loop header
LB: loop body
LE: loop exit
PB: predicated region body
PF: predicated region fallthrough
CT: control target
= control target key end

     0   :  { %s585_s15 = smov 0   ;;  %s786_s0 = inlined_call_operand.vmem [shape: f32[512,128], index: 0, kind: input, shape index: {}]   ;;  %s787_s1 = inlined_call_operand.vmem [shape: f32[1,128], index: 1, kind: input, shape index: {}]   ;;  %s788_s2 = inlined_call_operand.vmem [shape: f32[1,128], index: 2, kind: input, shape index: {}]   ;;  %s789_s3 = inlined_call_operand.vmem [shape: f32[512,128], index: 3, kind: input, shape index: {}]   ;;  %s790_s4 = inlined_call_operand.vmem [shape: f32[512,128], index: 4, kind: output, shape index: {}]  }
   0x1 LB: > { %s529_s16 = sadd.s32 4294967295, %s558_s15   ;;  %p533_p0 = scmp.ge.s32.totalorder %s558_s15, 1  ;;  %s558_s15 = sphi %s585_s15, %s14_s15  }
   0x2   : > { %p174_p1 = scmp.lt.s32.totalorder %s558_s15, 3 }
   0x4   : > { %p175_p2 = pnand %p533_p0, %p174_p1 }
   0x5   : > { %s534_s17 = sshll.u32 (!%p175_p2), %s529_s16, 5  ;;  %v598_v0 = vld [vmem:[%s787_s1] ss:$0 sm:$0xff] (!%p175_p2) }
   0x6   : > { %178 = sbr.rel (%p175_p2) target bundleno = 55 (0x37), region = 36  ;;  %p206_p3 = scmp.lt.s32.totalorder (!%p175_p2), %s534_s17, 63  ;;  %v616_v2 = vld [vmem:[%s788_s2] ss:$0 sm:$0xff] (!%p175_p2) }
   0xd   : > { %s792_s17 = smov (!%p206_p3, %s534_s17), 63 }
   0xe   : > { %s593_s18 = sshll.u32 %s792_s17, 3 }
   0xf   : > { %s604_s23 = scalar_lea.vmem %s786_s0, %s593_s18  ;;  %s610_s26 = scalar_lea.vmem %s789_s3, %s593_s18 }
  0x10   : > { %v223_v1 = vld [vmem:[%s604_s23] sm:$0xff]  ;;  %v224_v3 = vld [vmem:[%s604_s23 + $0x8] sm:$0xff]  ;;  %v225_v7 = vld [vmem:[%s604_s23 + $0x10] sm:$0xff]  ;;  %s646_s5 = scalar_lea.vmem %s790_s4, %s593_s18 }
  0x11   : > { %v262_v4 = vmul.f32 %v598_v0, %v223_v1  ;;  %v333_v5 = vld [vmem:[%s610_s26] sm:$0xff]  ;;  %v263_v6 = vmul.f32 %v598_v0, %v224_v3  ;;  %v334_v8 = vld [vmem:[%s610_s26 + $0x8] sm:$0xff]  ;;  %v264_v9 = vmul.f32 %v598_v0, %v225_v7  ;;  %v226_v10 = vld [vmem:[%s604_s23 + $0x18] sm:$0xff] }
  0x12   : > { %v227_v11 = vld [vmem:[%s604_s23 + $0x20] sm:$0xff]  ;;  %v335_v14 = vld [vmem:[%s610_s26 + $0x10] sm:$0xff]  ;;  %v265_v15 = vmul.f32 %v598_v0, %v226_v10  ;;  %v336_v16 = vld [vmem:[%s610_s26 + $0x18] sm:$0xff] }
  0x13   : > { %v301_v12 = vadd.f32 %v616_v2, %v262_v4  ;;  %v302_v13 = vadd.f32 %v616_v2, %v263_v6  ;;  %v266_v17 = vmul.f32 %v598_v0, %v227_v11  ;;  %v228_v18 = vld [vmem:[%s604_s23 + $0x28] sm:$0xff]  ;;  %v303_v19 = vadd.f32 %v616_v2, %v264_v9  ;;  %v337_v20 = vld [vmem:[%s610_s26 + $0x20] sm:$0xff]  ;;  %v229_v22 = vld [vmem:[%s604_s23 + $0x30] sm:$0xff] }
  0x14   : > { %v267_v21 = vmul.f32 %v598_v0, %v228_v18  ;;  %v230_v23 = vld [vmem:[%s604_s23 + $0x38] sm:$0xff]  ;;  %v304_v26 = vadd.f32 %v616_v2, %v265_v15  ;;  %v338_v28 = vld [vmem:[%s610_s26 + $0x28] sm:$0xff]  ;;  %v268_v31 = vmul.f32 %v598_v0, %v229_v22  ;;  %v231_v33 = vld [vmem:[%s604_s23 + $0x40] sm:$0xff] }
  0x15   : > { %v365_v24 = vadd.f32 %v333_v5, %v301_v12  ;;  %v366_v25 = vadd.f32 %v334_v8, %v302_v13  ;;  %v305_v27 = vadd.f32 %v616_v2, %v266_v17  ;;  %v367_v29 = vadd.f32 %v335_v14, %v303_v19  ;;  %v232_v34 = vld [vmem:[%s604_s23 + $0x48] sm:$0xff]  ;;  %v339_v39 = vld [vmem:[%s610_s26 + $0x30] sm:$0xff]  ;;  %v340_v40 = vld [vmem:[%s610_s26 + $0x38] sm:$0xff] }
  0x16   : > { %v306_v30 = vadd.f32 %v616_v2, %v267_v21  ;;  %v269_v32 = vmul.f32 %v598_v0, %v230_v23  ;;  %v368_v37 = vadd.f32 %v336_v16, %v304_v26  ;;  %v233_v41 = vld [vmem:[%s604_s23 + $0x50] sm:$0xff]  ;;  %v307_v44 = vadd.f32 %v616_v2, %v268_v31  ;;  %v234_v46 = vld [vmem:[%s604_s23 + $0x58] sm:$0xff]  ;;  %v235_v47 = vld [vmem:[%s604_s23 + $0x60] sm:$0xff] }
  0x17   : > { %v397_v35 = vmax.f32 %v365_v24, 0.0  ;;  %v398_v36 = vmax.f32 %v366_v25, 0.0  ;;  %v369_v38 = vadd.f32 %v337_v20, %v305_v27  ;;  %v399_v42 = vmax.f32 %v367_v29, 0.0  ;;  %v236_v52 = vld [vmem:[%s604_s23 + $0x68] sm:$0xff]  ;;  %v341_v56 = vld [vmem:[%s610_s26 + $0x40] sm:$0xff]  ;;  %v343_v61 = vld [vmem:[%s610_s26 + $0x50] sm:$0xff] }
  0x18   : > { %v370_v43 = vadd.f32 %v338_v28, %v306_v30  ;;  %v308_v45 = vadd.f32 %v616_v2, %v269_v32  ;;  %v400_v48 = vmax.f32 %v368_v37, 0.0  ;;  %v270_v50 = vmul.f32 %v598_v0, %v231_v33  ;;  %v342_v57 = vld [vmem:[%s610_s26 + $0x48] sm:$0xff]  ;;  %v237_v1 = vld [vmem:[%s604_s23 + $0x70] sm:$0xff]  ;;  %v238_v3 = vld [vmem:[%s604_s23 + $0x78] sm:$0xff] }
  0x19   : > { %429 = vst [vmem:[%s646_s5] sm:$0xff] %v397_v35  ;;  %430 = vst [vmem:[%s646_s5 + $0x8] sm:$0xff] %v398_v36  ;;  %v401_v49 = vmax.f32 %v369_v38, 0.0  ;;  %v271_v51 = vmul.f32 %v598_v0, %v232_v34  ;;  %v371_v54 = vadd.f32 %v339_v39, %v307_v44  ;;  %v272_v58 = vmul.f32 %v598_v0, %v233_v41  ;;  %v344_v7 = vld [vmem:[%s610_s26 + $0x58] sm:$0xff]  ;;  %v345_v8 = vld [vmem:[%s610_s26 + $0x60] sm:$0xff] }
  0x1a   : > { %431 = vst [vmem:[%s646_s5 + $0x10] sm:$0xff] %v399_v42  ;;  %v402_v53 = vmax.f32 %v370_v43, 0.0  ;;  %v372_v55 = vadd.f32 %v340_v40, %v308_v45  ;;  %432 = vst [vmem:[%s646_s5 + $0x18] sm:$0xff] %v400_v48  ;;  %v309_v59 = vadd.f32 %v616_v2, %v270_v50  ;;  %v273_v62 = vmul.f32 %v598_v0, %v234_v46  ;;  %v346_v14 = vld [vmem:[%s610_s26 + $0x68] sm:$0xff]  ;;  %v239_v19 = vld [vmem:[%s604_s23 + $0x80] sm:$0xff] }
  0x1b   : > { %433 = vst [vmem:[%s646_s5 + $0x20] sm:$0xff] %v401_v49  ;;  %v310_v60 = vadd.f32 %v616_v2, %v271_v51  ;;  %v274_v63 = vmul.f32 %v598_v0, %v235_v47  ;;  %v403_v4 = vmax.f32 %v371_v54, 0.0  ;;  %v311_v6 = vadd.f32 %v616_v2, %v272_v58  ;;  %v240_v20 = vld [vmem:[%s604_s23 + $0x88] sm:$0xff]  ;;  %v347_v25 = vld [vmem:[%s610_s26 + $0x70] sm:$0xff]  ;;  %v348_v26 = vld [vmem:[%s610_s26 + $0x78] sm:$0xff] }
  0x1c   : > { %434 = vst [vmem:[%s646_s5 + $0x28] sm:$0xff] %v402_v53  ;;  %v404_v5 = vmax.f32 %v372_v55, 0.0  ;;  %v275_v9 = vmul.f32 %v598_v0, %v236_v52  ;;  %v373_v10 = vadd.f32 %v341_v56, %v309_v59  ;;  %v312_v12 = vadd.f32 %v616_v2, %v273_v62  ;;  %v241_v27 = vld [vmem:[%s604_s23 + $0x90] sm:$0xff]  ;;  %v242_v32 = vld [vmem:[%s604_s23 + $0x98] sm:$0xff]  ;;  %v243_v33 = vld [vmem:[%s604_s23 + $0xa0] sm:$0xff] }
  0x1d   : > { %v374_v11 = vadd.f32 %v342_v57, %v310_v60  ;;  %v313_v13 = vadd.f32 %v616_v2, %v274_v63  ;;  %435 = vst [vmem:[%s646_s5 + $0x30] sm:$0xff] %v403_v4  ;;  %v375_v15 = vadd.f32 %v343_v61, %v311_v6  ;;  %v276_v17 = vmul.f32 %v598_v0, %v237_v1  ;;  %v244_v38 = vld [vmem:[%s604_s23 + $0xa8] sm:$0xff]  ;;  %v349_v42 = vld [vmem:[%s610_s26 + $0x80] sm:$0xff]  ;;  %v351_v47 = vld [vmem:[%s610_s26 + $0x90] sm:$0xff] }
  0x1e   : > { %436 = vst [vmem:[%s646_s5 + $0x38] sm:$0xff] %v404_v5  ;;  %v314_v16 = vadd.f32 %v616_v2, %v275_v9  ;;  %v277_v18 = vmul.f32 %v598_v0, %v238_v3  ;;  %v405_v21 = vmax.f32 %v373_v10, 0.0  ;;  %v376_v23 = vadd.f32 %v344_v7, %v312_v12  ;;  %v350_v43 = vld [vmem:[%s610_s26 + $0x88] sm:$0xff]  ;;  %v245_v50 = vld [vmem:[%s604_s23 + $0xb0] sm:$0xff]  ;;  %v246_v51 = vld [vmem:[%s604_s23 + $0xb8] sm:$0xff] }
  0x1f   : > { %v406_v22 = vmax.f32 %v374_v11, 0.0  ;;  %v377_v24 = vadd.f32 %v345_v8, %v313_v13  ;;  %v407_v28 = vmax.f32 %v375_v15, 0.0  ;;  %v315_v30 = vadd.f32 %v616_v2, %v276_v17  ;;  %v352_v55 = vld [vmem:[%s610_s26 + $0x98] sm:$0xff]  ;;  %v353_v56 = vld [vmem:[%s610_s26 + $0xa0] sm:$0xff]  ;;  %v354_v62 = vld [vmem:[%s610_s26 + $0xa8] sm:$0xff] }
  0x20   : > { %v378_v29 = vadd.f32 %v346_v14, %v314_v16  ;;  %v316_v31 = vadd.f32 %v616_v2, %v277_v18  ;;  %437 = vst [vmem:[%s646_s5 + $0x40] sm:$0xff] %v405_v21  ;;  %v408_v34 = vmax.f32 %v376_v23, 0.0  ;;  %v278_v36 = vmul.f32 %v598_v0, %v239_v19  ;;  %v247_v5 = vld [vmem:[%s604_s23 + $0xc0] sm:$0xff]  ;;  %v248_v6 = vld [vmem:[%s604_s23 + $0xc8] sm:$0xff]  ;;  %v355_v11 = vld [vmem:[%s610_s26 + $0xb0] sm:$0xff] }
  0x21   : > { %438 = vst [vmem:[%s646_s5 + $0x48] sm:$0xff] %v406_v22  ;;  %v409_v35 = vmax.f32 %v377_v24, 0.0  ;;  %v279_v37 = vmul.f32 %v598_v0, %v240_v20  ;;  %439 = vst [vmem:[%s646_s5 + $0x50] sm:$0xff] %v407_v28  ;;  %v379_v40 = vadd.f32 %v347_v25, %v315_v30  ;;  %v280_v44 = vmul.f32 %v598_v0, %v241_v27  ;;  %v356_v12 = vld [vmem:[%s610_s26 + $0xb8] sm:$0xff]  ;;  %v249_v13 = vld [vmem:[%s604_s23 + $0xd0] sm:$0xff] }
  0x22   : > { %v410_v39 = vmax.f32 %v378_v29, 0.0  ;;  %v380_v41 = vadd.f32 %v348_v26, %v316_v31  ;;  %440 = vst [vmem:[%s646_s5 + $0x58] sm:$0xff] %v408_v34  ;;  %v317_v45 = vadd.f32 %v616_v2, %v278_v36  ;;  %v281_v48 = vmul.f32 %v598_v0, %v242_v32  ;;  %v250_v18 = vld [vmem:[%s604_s23 + $0xd8] sm:$0xff]  ;;  %v251_v19 = vld [vmem:[%s604_s23 + $0xe0] sm:$0xff]  ;;  %v252_v24 = vld [vmem:[%s604_s23 + $0xe8] sm:$0xff] }
  0x23   : > { %441 = vst [vmem:[%s646_s5 + $0x60] sm:$0xff] %v409_v35  ;;  %v318_v46 = vadd.f32 %v616_v2, %v279_v37  ;;  %v282_v49 = vmul.f32 %v598_v0, %v243_v33  ;;  %v411_v52 = vmax.f32 %v379_v40, 0.0  ;;  %v319_v54 = vadd.f32 %v616_v2, %v280_v44  ;;  %v357_v28 = vld [vmem:[%s610_s26 + $0xc0] sm:$0xff]  ;;  %v358_v29 = vld [vmem:[%s610_s26 + $0xc8] sm:$0xff]  ;;  %v359_v33 = vld [vmem:[%s610_s26 + $0xd0] sm:$0xff] }
  0x24   : > { %442 = vst [vmem:[%s646_s5 + $0x68] sm:$0xff] %v410_v39  ;;  %v412_v53 = vmax.f32 %v380_v41, 0.0  ;;  %v283_v57 = vmul.f32 %v598_v0, %v244_v38  ;;  %v381_v58 = vadd.f32 %v349_v42, %v317_v45  ;;  %v320_v60 = vadd.f32 %v616_v2, %v281_v48  ;;  %v253_v36 = vld [vmem:[%s604_s23 + $0xf0] sm:$0xff]  ;;  %v254_v37 = vld [vmem:[%s604_s23 + $0xf8] sm:$0xff]  ;;  %v361_v42 = vld [vmem:[%s610_s26 + $0xe0] sm:$0xff] }
  0x25   : > { %v382_v59 = vadd.f32 %v350_v43, %v318_v46  ;;  %v321_v61 = vadd.f32 %v616_v2, %v282_v49  ;;  %443 = vst [vmem:[%s646_s5 + $0x70] sm:$0xff] %v411_v52  ;;  %v383_v63 = vadd.f32 %v351_v47, %v319_v54  ;;  %v284_v3 = vmul.f32 %v598_v0, %v245_v50  ;;  %v360_v41 = vld [vmem:[%s610_s26 + $0xd8] sm:$0xff]  ;;  %v362_v48 = vld [vmem:[%s610_s26 + $0xe8] sm:$0xff] }
  0x26   : > { %444 = vst [vmem:[%s646_s5 + $0x78] sm:$0xff] %v412_v53  ;;  %v322_v1 = vadd.f32 %v616_v2, %v283_v57  ;;  %v285_v4 = vmul.f32 %v598_v0, %v246_v51  ;;  %v413_v7 = vmax.f32 %v381_v58, 0.0  ;;  %v384_v9 = vadd.f32 %v352_v55, %v320_v60  ;;  %v363_v57 = vld [vmem:[%s610_s26 + $0xf0] sm:$0xff]  ;;  %v364_v58 = vld [vmem:[%s610_s26 + $0xf8] sm:$0xff] }
  0x27   : > { %v414_v8 = vmax.f32 %v382_v59, 0.0  ;;  %v385_v10 = vadd.f32 %v353_v56, %v321_v61  ;;  %v415_v14 = vmax.f32 %v383_v63, 0.0  ;;  %v323_v16 = vadd.f32 %v616_v2, %v284_v3 }
  0x28   : > { %v386_v15 = vadd.f32 %v354_v62, %v322_v1  ;;  %v324_v17 = vadd.f32 %v616_v2, %v285_v4  ;;  %445 = vst [vmem:[%s646_s5 + $0x80] sm:$0xff] %v413_v7  ;;  %v416_v20 = vmax.f32 %v384_v9, 0.0  ;;  %v286_v22 = vmul.f32 %v598_v0, %v247_v5 }
  0x29   : > { %446 = vst [vmem:[%s646_s5 + $0x88] sm:$0xff] %v414_v8  ;;  %v417_v21 = vmax.f32 %v385_v10, 0.0  ;;  %v287_v23 = vmul.f32 %v598_v0, %v248_v6  ;;  %447 = vst [vmem:[%s646_s5 + $0x90] sm:$0xff] %v415_v14  ;;  %v387_v26 = vadd.f32 %v355_v11, %v323_v16  ;;  %v288_v30 = vmul.f32 %v598_v0, %v249_v13 }
  0x2a   : > { %v418_v25 = vmax.f32 %v386_v15, 0.0  ;;  %v388_v27 = vadd.f32 %v356_v12, %v324_v17  ;;  %448 = vst [vmem:[%s646_s5 + $0x98] sm:$0xff] %v416_v20  ;;  %v325_v31 = vadd.f32 %v616_v2, %v286_v22  ;;  %v289_v34 = vmul.f32 %v598_v0, %v250_v18 }
  0x2b   : > { %449 = vst [vmem:[%s646_s5 + $0xa0] sm:$0xff] %v417_v21  ;;  %v326_v32 = vadd.f32 %v616_v2, %v287_v23  ;;  %v290_v35 = vmul.f32 %v598_v0, %v251_v19  ;;  %v419_v38 = vmax.f32 %v387_v26, 0.0  ;;  %v327_v40 = vadd.f32 %v616_v2, %v288_v30 }
  0x2c   : > { %450 = vst [vmem:[%s646_s5 + $0xa8] sm:$0xff] %v418_v25  ;;  %v420_v39 = vmax.f32 %v388_v27, 0.0  ;;  %v291_v43 = vmul.f32 %v598_v0, %v252_v24  ;;  %v389_v44 = vadd.f32 %v357_v28, %v325_v31  ;;  %v328_v46 = vadd.f32 %v616_v2, %v289_v34 }
  0x2d   : > { %v390_v45 = vadd.f32 %v358_v29, %v326_v32  ;;  %v329_v47 = vadd.f32 %v616_v2, %v290_v35  ;;  %451 = vst [vmem:[%s646_s5 + $0xb0] sm:$0xff] %v419_v38  ;;  %v391_v49 = vadd.f32 %v359_v33, %v327_v40  ;;  %v292_v51 = vmul.f32 %v598_v0, %v253_v36 }
  0x2e   : > { %452 = vst [vmem:[%s646_s5 + $0xb8] sm:$0xff] %v420_v39  ;;  %v330_v50 = vadd.f32 %v616_v2, %v291_v43  ;;  %v293_v52 = vmul.f32 %v598_v0, %v254_v37  ;;  %v421_v53 = vmax.f32 %v389_v44, 0.0  ;;  %v392_v55 = vadd.f32 %v360_v41, %v328_v46 }
  0x2f   : > { %v422_v54 = vmax.f32 %v390_v45, 0.0  ;;  %v393_v56 = vadd.f32 %v361_v42, %v329_v47  ;;  %v423_v59 = vmax.f32 %v391_v49, 0.0  ;;  %v331_v61 = vadd.f32 %v616_v2, %v292_v51 }
  0x30   : > { %v394_v60 = vadd.f32 %v362_v48, %v330_v50  ;;  %v332_v62 = vadd.f32 %v616_v2, %v293_v52  ;;  %453 = vst [vmem:[%s646_s5 + $0xc0] sm:$0xff] %v421_v53  ;;  %v424_v0 = vmax.f32 %v392_v55, 0.0 }
  0x31   : > { %454 = vst [vmem:[%s646_s5 + $0xc8] sm:$0xff] %v422_v54  ;;  %v425_v63 = vmax.f32 %v393_v56, 0.0  ;;  %455 = vst [vmem:[%s646_s5 + $0xd0] sm:$0xff] %v423_v59  ;;  %v395_v3 = vadd.f32 %v363_v57, %v331_v61 }
  0x32   : > { %v426_v1 = vmax.f32 %v394_v60, 0.0  ;;  %v396_v4 = vadd.f32 %v364_v58, %v332_v62  ;;  %456 = vst [vmem:[%s646_s5 + $0xd8] sm:$0xff] %v424_v0 }
  0x33   : > { %457 = vst [vmem:[%s646_s5 + $0xe0] sm:$0xff] %v425_v63  ;;  %v427_v5 = vmax.f32 %v395_v3, 0.0 }
  0x34   : > { %458 = vst [vmem:[%s646_s5 + $0xe8] sm:$0xff] %v426_v1  ;;  %v428_v6 = vmax.f32 %v396_v4, 0.0 }
  0x35   : > { %459 = vst [vmem:[%s646_s5 + $0xf0] sm:$0xff] %v427_v5 }
  0x36   : > { %460 = vst [vmem:[%s646_s5 + $0xf8] sm:$0xff] %v428_v6 }
  0x37 PF: > { %s14_s15 = sadd.s32 1, %s558_s15  }
  0x38   : > { %p11_p4 = scmp.ge.s32.totalorder %s14_s15, 4  }
  0x3a   :  { %13 = sbr.rel (!%p11_p4) target bundleno = 1 (0x1), region = 69 }

</bundles_post_ra>
